<compile_context>
chip_gen: v7x
topology: tpu7x:2x2x1
jax: 0.10.0
libtpu: 0.0.40
codegen_flags: <defaults>
</compile_context>

<pallas_src>
import jax
import jax.numpy as jnp
from jax.experimental import pallas as pl
from jax.experimental.pallas import tpu as pltpu


# ---------------------------------------------------------------------------
# Conv kernel: padded rows @ banded weights (in-kernel im2col-free conv)
# ---------------------------------------------------------------------------
def _make_conv_kernel(n_out, kh):
    def kernel(*refs):
        x_ref = refs[0]                         # (Hp, Wp*Cin)  bf16
        w_refs = refs[1:1 + n_out]              # each (KH, Wp*Cin, W*Cout_t) bf16
        o_refs = refs[1 + n_out:]               # each (H, W*Cout_t) f32
        out_h = o_refs[0].shape[0]
        accs = [jnp.zeros(o.shape, jnp.float32) for o in o_refs]
        for ky in range(kh):
            row = x_ref[ky:ky + out_h, :]       # shifted padded rows, read from VMEM
            for t in range(n_out):
                accs[t] = accs[t] + jnp.dot(
                    row, w_refs[t][ky], preferred_element_type=jnp.float32)
        for t in range(n_out):
            o_refs[t][...] = accs[t].astype(o_refs[t].dtype)
    return kernel


def conv3x3_banded(x_rows, banded_ws):
    """x_rows: (N, Hp, Wp*Cin) bf16 padded rows.
    banded_ws: list of (KH, Wp*Cin, W*Cout_t) bf16.
    Returns a tuple of (N, H, W*Cout_t) float32 conv outputs."""
    n, hp, k = x_rows.shape
    kh = banded_ws[0].shape[0]
    h = hp - (kh - 1)
    n_out = len(banded_ws)
    out_shape = [jax.ShapeDtypeStruct((n, h, bw.shape[2]), jnp.float32)
                 for bw in banded_ws]
    in_specs = [pl.BlockSpec((None, hp, k), lambda i: (i, 0, 0))]
    in_specs += [pl.BlockSpec(bw.shape, lambda i: (0, 0, 0)) for bw in banded_ws]
    out_specs = [pl.BlockSpec((None, h, bw.shape[2]), lambda i: (i, 0, 0))
                 for bw in banded_ws]
    res = pl.pallas_call(
        _make_conv_kernel(n_out, kh),
        grid=(n,),
        in_specs=in_specs,
        out_specs=out_specs,
        out_shape=out_shape,
        compiler_params=pltpu.CompilerParams(
            dimension_semantics=("parallel",),
            vmem_limit_bytes=32 * 1024 * 1024),
    )(x_rows, *banded_ws)
    if not isinstance(res, (tuple, list)):
        res = (res,)
    return tuple(res)


def _banded_weight(w_hwio, out_w):
    """Fold the kx taps of a KHxKW conv into per-kernel-row matmul weights.
    Result[ky] has shape ((out_w+KW-1)*Cin, out_w*Cout) so that
    padded_row(y+ky) @ Result[ky] is kernel-row ky's contribution to output row y."""
    kh, kw, cin, cout = w_hwio.shape
    wp = out_w + kw - 1
    sel = (jnp.arange(wp)[None, :, None]
           == jnp.arange(out_w)[None, None, :] + jnp.arange(kw)[:, None, None]
           ).astype(w_hwio.dtype)                              # (KW, Wp, W)
    bw = jnp.einsum("kpx,hkio->hpixo", sel, w_hwio)            # (KH, Wp, Cin, W, Cout)
    return bw.reshape(kh, wp * cin, out_w * cout)


# ---------------------------------------------------------------------------
# BatchNorm kernels (two-phase, tiled, training-mode statistics)
# ---------------------------------------------------------------------------
def _bn_stats_kernel(y_ref, stats_ref):
    r = pl.program_id(1)
    y = y_ref[...]
    s = jnp.concatenate(
        [jnp.sum(y, axis=0, keepdims=True),
         jnp.sum(y * y, axis=0, keepdims=True)], axis=0)

    @pl.when(r == 0)
    def _():
        stats_ref[...] = jnp.zeros_like(stats_ref)

    stats_ref[...] += s


def _bn_norm_kernel(y_ref, scale_ref, shift_ref, o_ref):
    o_ref[...] = y_ref[...] * scale_ref[...] + shift_ref[...]


def _bn_stats_up_kernel(xh_ref, xl_ref, d_ref, e_ref, stats_ref):
    # Fused: y = xh + nearest_upsample2(xl), done as two 0/1 replication matmuls.
    r = pl.program_id(1)
    up = jnp.dot(d_ref[...],
                 jnp.dot(xl_ref[...], e_ref[...], preferred_element_type=jnp.float32),
                 preferred_element_type=jnp.float32)
    y = xh_ref[...] + up
    s = jnp.concatenate(
        [jnp.sum(y, axis=0, keepdims=True),
         jnp.sum(y * y, axis=0, keepdims=True)], axis=0)

    @pl.when(r == 0)
    def _():
        stats_ref[...] = jnp.zeros_like(stats_ref)

    stats_ref[...] += s


def _bn_norm_up_kernel(xh_ref, xl_ref, d_ref, e_ref, scale_ref, shift_ref, o_ref):
    up = jnp.dot(d_ref[...],
                 jnp.dot(xl_ref[...], e_ref[...], preferred_element_type=jnp.float32),
                 preferred_element_type=jnp.float32)
    o_ref[...] = (xh_ref[...] + up) * scale_ref[...] + shift_ref[...]


def _pick_row_tile(h, unit):
    for t in (512, 256, 128, 64, 32, 16, 8):
        if t % unit == 0 and t <= h and h % t == 0:
            return t
    return h


def _bn_scale_shift(stats, gamma, beta, lanes_per_channel, count, eps):
    """stats: (N, 2, W*C) per-image per-lane sum/sumsq -> lane-flattened scale/shift."""
    c = gamma.shape[0]
    s = jnp.sum(stats, axis=0)                                    # (2, W*C)
    mean = jnp.sum(s[0].reshape(lanes_per_channel, c), axis=0) / count
    ex2 = jnp.sum(s[1].reshape(lanes_per_channel, c), axis=0) / count
    var = ex2 - mean * mean                                       # biased (training mode)
    inv = jax.lax.rsqrt(var + eps)
    scale = gamma * inv
    shift = beta - mean * scale
    wc = lanes_per_channel * c
    return (jnp.tile(scale, lanes_per_channel).reshape(1, wc),
            jnp.tile(shift, lanes_per_channel).reshape(1, wc))


def batchnorm_rows(y_rows, gamma, beta, eps=1e-5):
    """BatchNorm2d over a (N, H, W*C) lane-flattened NHWC tensor (training-mode stats)."""
    n, h, wc = y_rows.shape
    c = gamma.shape[0]
    w = wc // c
    t = _pick_row_tile(h, 8)
    r = h // t
    stats = pl.pallas_call(
        _bn_stats_kernel,
        grid=(n, r),
        in_specs=[pl.BlockSpec((None, t, wc), lambda i, j: (i, j, 0))],
        out_specs=pl.BlockSpec((None, 2, wc), lambda i, j: (i, 0, 0)),
        out_shape=jax.ShapeDtypeStruct((n, 2, wc), jnp.float32),
        compiler_params=pltpu.CompilerParams(
            dimension_semantics=("parallel", "arbitrary")),
    )(y_rows)
    scale, shift = _bn_scale_shift(stats, gamma, beta, w, jnp.float32(n * h * w), eps)
    return pl.pallas_call(
        _bn_norm_kernel,
        grid=(n, r),
        in_specs=[pl.BlockSpec((None, t, wc), lambda i, j: (i, j, 0)),
                  pl.BlockSpec((1, wc), lambda i, j: (0, 0)),
                  pl.BlockSpec((1, wc), lambda i, j: (0, 0))],
        out_specs=pl.BlockSpec((None, t, wc), lambda i, j: (i, j, 0)),
        out_shape=jax.ShapeDtypeStruct((n, h, wc), jnp.float32),
        compiler_params=pltpu.CompilerParams(
            dimension_semantics=("parallel", "parallel")),
    )(y_rows, scale, shift)


def batchnorm_add_upsample_rows(xh_rows, xl_rows, gamma, beta, eps=1e-5):
    """BatchNorm2d( xh + nearest_upsample2(xl) ), both inputs lane-flattened NHWC.
    The upsample + add is fused into both BN passes (no HBM intermediate)."""
    n, h, wc = xh_rows.shape
    _, h2, w2c = xl_rows.shape
    c = gamma.shape[0]
    w = wc // c
    w2 = w2c // c
    t = _pick_row_tile(h, 16)
    t2 = t // 2
    r = h // t
    # 0/1 replication matrices: rows (t x t/2) and lanes (W2*C x W*C).
    dmat = (jnp.arange(t)[:, None] // 2 == jnp.arange(t2)[None, :]).astype(jnp.float32)
    emat = jnp.einsum(
        "jx,cd->jcxd",
        (jnp.arange(w)[None, :] // 2 == jnp.arange(w2)[:, None]).astype(jnp.float32),
        jnp.eye(c, dtype=jnp.float32)).reshape(w2c, wc)
    common_in_specs = [
        pl.BlockSpec((None, t, wc), lambda i, j: (i, j, 0)),
        pl.BlockSpec((None, t2, w2c), lambda i, j: (i, j, 0)),
        pl.BlockSpec((t, t2), lambda i, j: (0, 0)),
        pl.BlockSpec((w2c, wc), lambda i, j: (0, 0)),
    ]
    stats = pl.pallas_call(
        _bn_stats_up_kernel,
        grid=(n, r),
        in_specs=common_in_specs,
        out_specs=pl.BlockSpec((None, 2, wc), lambda i, j: (i, 0, 0)),
        out_shape=jax.ShapeDtypeStruct((n, 2, wc), jnp.float32),
        compiler_params=pltpu.CompilerParams(
            dimension_semantics=("parallel", "arbitrary")),
    )(xh_rows, xl_rows, dmat, emat)
    scale, shift = _bn_scale_shift(stats, gamma, beta, w, jnp.float32(n * h * w), eps)
    return pl.pallas_call(
        _bn_norm_up_kernel,
        grid=(n, r),
        in_specs=common_in_specs + [
            pl.BlockSpec((1, wc), lambda i, j: (0, 0)),
            pl.BlockSpec((1, wc), lambda i, j: (0, 0))],
        out_specs=pl.BlockSpec((None, t, wc), lambda i, j: (i, j, 0)),
        out_shape=jax.ShapeDtypeStruct((n, h, wc), jnp.float32),
        compiler_params=pltpu.CompilerParams(
            dimension_semantics=("parallel", "parallel")),
    )(xh_rows, xl_rows, dmat, emat, scale, shift)


# ---------------------------------------------------------------------------
# Conv_BN forward (alpha_in = alpha_out = 0.5, stride 1, groups 1, bias False)
# ---------------------------------------------------------------------------
def _hwio(w_oihw):
    return jnp.transpose(w_oihw, (2, 3, 1, 0))


def _pad_rows(x_nhwc, pad):
    """Spatial zero-pad then flatten (W, C) into the lane axis: (N, H+2p, (W+2p)*C)."""
    n, h, w, c = x_nhwc.shape
    xp = jnp.pad(x_nhwc, ((0, 0), (pad, pad), (pad, pad), (0, 0)))
    return xp.reshape(n, h + 2 * pad, (w + 2 * pad) * c)


@jax.jit
def conv_bn_forward(x_h_nchw, x_l_nchw, params):
    eps = 1e-5
    # --- single NCHW -> NHWC conversion at entry ---
    xh = jnp.transpose(x_h_nchw, (0, 2, 3, 1))
    xl = jnp.transpose(x_l_nchw, (0, 2, 3, 1))
    n, h, w, cin_h = xh.shape
    _, h2, w2, cin_l = xl.shape
    cout_h = params["w_h2h"].shape[0]
    cout_l = params["w_l2l"].shape[0]

    # --- weight repacking: HWIO, low-branch fusion, banded form, bf16 ---
    w_h2h = _hwio(params["w_h2h"])
    w_h2l = _hwio(params["w_h2l"])
    w_l2l = _hwio(params["w_l2l"])
    w_l2h = _hwio(params["w_l2h"])
    # Low branch runs on concat([avgpool2(x_h), x_l], channel):
    #   output A = conv_h2l(pool(x_h)) + conv_l2l(x_l)   (pre-BN low sum, fused add)
    #   output B = conv_l2h(x_l)                          (zero weights on pooled x_h)
    w_low_a = jnp.concatenate([w_h2l, w_l2l], axis=2)
    w_low_b = jnp.concatenate(
        [jnp.zeros((w_l2h.shape[0], w_l2h.shape[1], cin_h, cout_h), w_l2h.dtype),
         w_l2h], axis=2)
    bw_h2h = _banded_weight(w_h2h, w).astype(jnp.bfloat16)
    bw_low_a = _banded_weight(w_low_a, w2).astype(jnp.bfloat16)
    bw_low_b = _banded_weight(w_low_b, w2).astype(jnp.bfloat16)

    # --- high-frequency conv: x_h2h ---
    xh_rows = _pad_rows(xh, 1).astype(jnp.bfloat16)
    (x_h2h,) = conv3x3_banded(xh_rows, [bw_h2h])

    # --- fused low-frequency conv: (x_h2l + x_l2l, x_l2h) in one pallas_call ---
    xh_pool = xh.reshape(n, h2, 2, w2, 2, cin_h).mean(axis=(2, 4))
    xlow = jnp.concatenate([xh_pool, xl], axis=-1)
    xlow_rows = _pad_rows(xlow, 1).astype(jnp.bfloat16)
    y_low, x_l2h = conv3x3_banded(xlow_rows, [bw_low_a, bw_low_b])

    # --- BatchNorm (training-mode stats); upsample+add fused for the high branch ---
    out_h_rows = batchnorm_add_upsample_rows(
        x_h2h, x_l2h, params["bn_h_gamma"], params["bn_h_beta"], eps)
    out_l_rows = batchnorm_rows(
        y_low, params["bn_l_gamma"], params["bn_l_beta"], eps)

    # --- single NHWC -> NCHW conversion at exit ---
    out_h = out_h_rows.reshape(n, h, w, cout_h).transpose(0, 3, 1, 2)
    out_l = out_l_rows.reshape(n, h2, w2, cout_l).transpose(0, 3, 1, 2)
    return out_h, out_l


# ---------------------------------------------------------------------------
# Pure-JAX reference (same semantics as the PyTorch module defaults)
# ---------------------------------------------------------------------------
def _reference_forward(x_h, x_l, params, eps=1e-5):
    def conv(x, wgt):
        return jax.lax.conv_general_dilated(
            x, wgt, window_strides=(1, 1), padding=((1, 1), (1, 1)),
            dimension_numbers=("NCHW", "OIHW", "NCHW"))

    def bn(y, g, b):
        mean = y.mean(axis=(0, 2, 3), keepdims=True)
        var = ((y - mean) ** 2).mean(axis=(0, 2, 3), keepdims=True)
        return ((y - mean) * jax.lax.rsqrt(var + eps)
                * g.reshape(1, -1, 1, 1) + b.reshape(1, -1, 1, 1))

    def pool(x):
        nn, cc, hh, ww = x.shape
        return x.reshape(nn, cc, hh // 2, 2, ww // 2, 2).mean(axis=(3, 5))

    def up(x):
        return jnp.repeat(jnp.repeat(x, 2, axis=2), 2, axis=3)

    x_h2h = conv(x_h, params["w_h2h"])
    x_h2l = conv(pool(x_h), params["w_h2l"])
    x_l2l = conv(x_l, params["w_l2l"])
    x_l2h = up(conv(x_l, params["w_l2h"]))
    out_h = bn(x_l2h + x_h2h, params["bn_h_gamma"], params["bn_h_beta"])
    out_l = bn(x_h2l + x_l2l, params["bn_l_gamma"], params["bn_l_beta"])
    return out_h, out_l


if __name__ == "__main__":
    import numpy as np

    in_channels, out_channels, kernel_size = 4, 8, 3
    batch, height, width = 2, 16, 16
    cin_l = in_channels // 2
    cin_h = in_channels - cin_l
    cout_l = out_channels // 2
    cout_h = out_channels - cout_l

    key = jax.random.PRNGKey(0)
    k_xh, k_xl, k0, k1, k2, k3 = jax.random.split(key, 6)
    x_h = jax.random.normal(k_xh, (batch, cin_h, height, width), jnp.float32)
    x_l = jax.random.normal(k_xl, (batch, cin_l, height // 2, width // 2), jnp.float32)

    scale = 0.1
    params = {
        "w_h2h": scale * jax.random.normal(k0, (cout_h, cin_h, kernel_size, kernel_size), jnp.float32),
        "w_h2l": scale * jax.random.normal(k1, (cout_l, cin_h, kernel_size, kernel_size), jnp.float32),
        "w_l2l": scale * jax.random.normal(k2, (cout_l, cin_l, kernel_size, kernel_size), jnp.float32),
        "w_l2h": scale * jax.random.normal(k3, (cout_h, cin_l, kernel_size, kernel_size), jnp.float32),
        # BatchNorm2d default init: gamma=1, beta=0 (running stats unused in training-mode fwd)
        "bn_h_gamma": jnp.ones((cout_h,), jnp.float32),
        "bn_h_beta": jnp.zeros((cout_h,), jnp.float32),
        "bn_l_gamma": jnp.ones((cout_l,), jnp.float32),
        "bn_l_beta": jnp.zeros((cout_l,), jnp.float32),
    }

    out_h, out_l = jax.block_until_ready(conv_bn_forward(x_h, x_l, params))
    assert out_h.shape == (batch, cout_h, height, width), out_h.shape
    assert out_l.shape == (batch, cout_l, height // 2, width // 2), out_l.shape

    ref_h, ref_l = jax.block_until_ready(_reference_forward(x_h, x_l, params))
    np.testing.assert_allclose(np.asarray(out_h), np.asarray(ref_h), rtol=3e-2, atol=3e-2)
    np.testing.assert_allclose(np.asarray(out_l), np.asarray(ref_l), rtol=3e-2, atol=3e-2)
    print("KERNEL_OK")
</pallas_src>

<mosaic_0001>
module attributes {stable_mosaic.version = 11 : i64} {
  func.func @kernel(%arg0: i32, %arg1: memref<1x18x36xbf16, #tpu.memory_space<vmem>>, %arg2: memref<3x36x64xbf16, #tpu.memory_space<vmem>>, %arg3: memref<1x16x64xf32, #tpu.memory_space<vmem>>) attributes {dimension_semantics = [#tpu.dimension_semantics<parallel>], iteration_bounds = array<i64: 2>, scalar_prefetch = 0 : i64, scratch_operands = 0 : i64, tpu.core_type = #tpu.core_type<tc>, window_params = [{transform_indices = @transform_0, window_bounds = array<i64: 1, 18, 36>}, {pipeline_mode = #tpu.pipeline_mode<synchronous>, transform_indices = @transform_1, window_bounds = array<i64: 3, 36, 64>}, {transform_indices = @transform_2, window_bounds = array<i64: 1, 16, 64>}]} {
    %cst = arith.constant 0.000000e+00 : f32
    %0 = vector.broadcast %cst : f32 to vector<16x64xf32>
    %c0 = arith.constant 0 : index
    %c0_0 = arith.constant 0 : index
    %c0_1 = arith.constant 0 : index
    %1 = vector.load %arg1[%c0, %c0_0, %c0_1] : memref<1x18x36xbf16, #tpu.memory_space<vmem>>, vector<1x16x36xbf16>
    %2 = vector.shape_cast %1 : vector<1x16x36xbf16> to vector<16x36xbf16>
    %c0_2 = arith.constant 0 : index
    %c0_3 = arith.constant 0 : index
    %c0_4 = arith.constant 0 : index
    %3 = vector.load %arg2[%c0_2, %c0_3, %c0_4] : memref<3x36x64xbf16, #tpu.memory_space<vmem>>, vector<1x36x64xbf16>
    %4 = vector.shape_cast %3 : vector<1x36x64xbf16> to vector<36x64xbf16>
    %cst_5 = arith.constant dense<0.000000e+00> : vector<16x64xf32>
    %5 = tpu.matmul %2, %4, %cst_5 {dimension_numbers = #tpu.dot_dimension_numbers<[1], [0], [0], [1], [0, 0, 1, 1], [], []>} : vector<16x36xbf16>, vector<36x64xbf16>, vector<16x64xf32> -> vector<16x64xf32>
    %6 = arith.addf %0, %5 : vector<16x64xf32>
    %c0_6 = arith.constant 0 : index
    %c1 = arith.constant 1 : index
    %c0_7 = arith.constant 0 : index
    %7 = vector.load %arg1[%c0_6, %c1, %c0_7] : memref<1x18x36xbf16, #tpu.memory_space<vmem>>, vector<1x16x36xbf16>
    %8 = vector.shape_cast %7 : vector<1x16x36xbf16> to vector<16x36xbf16>
    %c1_8 = arith.constant 1 : index
    %c0_9 = arith.constant 0 : index
    %c0_10 = arith.constant 0 : index
    %9 = vector.load %arg2[%c1_8, %c0_9, %c0_10] : memref<3x36x64xbf16, #tpu.memory_space<vmem>>, vector<1x36x64xbf16>
    %10 = vector.shape_cast %9 : vector<1x36x64xbf16> to vector<36x64xbf16>
    %cst_11 = arith.constant dense<0.000000e+00> : vector<16x64xf32>
    %11 = tpu.matmul %8, %10, %cst_11 {dimension_numbers = #tpu.dot_dimension_numbers<[1], [0], [0], [1], [0, 0, 1, 1], [], []>} : vector<16x36xbf16>, vector<36x64xbf16>, vector<16x64xf32> -> vector<16x64xf32>
    %12 = arith.addf %6, %11 : vector<16x64xf32>
    %c0_12 = arith.constant 0 : index
    %c2 = arith.constant 2 : index
    %c0_13 = arith.constant 0 : index
    %13 = vector.load %arg1[%c0_12, %c2, %c0_13] : memref<1x18x36xbf16, #tpu.memory_space<vmem>>, vector<1x16x36xbf16>
    %14 = vector.shape_cast %13 : vector<1x16x36xbf16> to vector<16x36xbf16>
    %c2_14 = arith.constant 2 : index
    %c0_15 = arith.constant 0 : index
    %c0_16 = arith.constant 0 : index
    %15 = vector.load %arg2[%c2_14, %c0_15, %c0_16] : memref<3x36x64xbf16, #tpu.memory_space<vmem>>, vector<1x36x64xbf16>
    %16 = vector.shape_cast %15 : vector<1x36x64xbf16> to vector<36x64xbf16>
    %cst_17 = arith.constant dense<0.000000e+00> : vector<16x64xf32>
    %17 = tpu.matmul %14, %16, %cst_17 {dimension_numbers = #tpu.dot_dimension_numbers<[1], [0], [0], [1], [0, 0, 1, 1], [], []>} : vector<16x36xbf16>, vector<36x64xbf16>, vector<16x64xf32> -> vector<16x64xf32>
    %18 = arith.addf %12, %17 : vector<16x64xf32>
    %c0_18 = arith.constant 0 : index
    %c0_19 = arith.constant 0 : index
    %c0_20 = arith.constant 0 : index
    %19 = vector.load %arg3[%c0_18, %c0_19, %c0_20] : memref<1x16x64xf32, #tpu.memory_space<vmem>>, vector<1x16x64xf32>
    %20 = vector.shape_cast %19 : vector<1x16x64xf32> to vector<16x64xf32>
    %21 = vector.shape_cast %18 : vector<16x64xf32> to vector<1x16x64xf32>
    tpu.vector_store %arg3[%c0_18, %c0_19, %c0_20], %21 {strides = array<i32>} : memref<1x16x64xf32, #tpu.memory_space<vmem>>, vector<1x16x64xf32>,
    return
  }
  func.func @transform_0(%arg0: i32) -> (i32, i32, i32) {
    %c0_i32 = arith.constant 0 : i32
    %c0_i32_0 = arith.constant 0 : i32
    %c0_i32_1 = arith.constant 0 : i32
    return %arg0, %c0_i32, %c0_i32_0 : i32, i32, i32
  }
  func.func @transform_1(%arg0: i32) -> (i32, i32, i32) {
    %c0_i32 = arith.constant 0 : i32
    %c0_i32_0 = arith.constant 0 : i32
    %c0_i32_1 = arith.constant 0 : i32
    %c0_i32_2 = arith.constant 0 : i32
    return %c0_i32, %c0_i32_0, %c0_i32_1 : i32, i32, i32
  }
  func.func @transform_2(%arg0: i32) -> (i32, i32, i32) {
    %c0_i32 = arith.constant 0 : i32
    %c0_i32_0 = arith.constant 0 : i32
    %c0_i32_1 = arith.constant 0 : i32
    return %arg0, %c0_i32, %c0_i32_0 : i32, i32, i32
  }
}

module attributes {stable_mosaic.version = 11 : i64} {
  func.func @kernel(%arg0: i32, %arg1: memref<1x10x40xbf16, #tpu.memory_space<vmem>>, %arg2: memref<3x40x32xbf16, #tpu.memory_space<vmem>>, %arg3: memref<3x40x32xbf16, #tpu.memory_space<vmem>>, %arg4: memref<1x8x32xf32, #tpu.memory_space<vmem>>, %arg5: memref<1x8x32xf32, #tpu.memory_space<vmem>>) attributes {dimension_semantics = [#tpu.dimension_semantics<parallel>], iteration_bounds = array<i64: 2>, scalar_prefetch = 0 : i64, scratch_operands = 0 : i64, tpu.core_type = #tpu.core_type<tc>, window_params = [{transform_indices = @transform_0, window_bounds = array<i64: 1, 10, 40>}, {pipeline_mode = #tpu.pipeline_mode<synchronous>, transform_indices = @transform_1, window_bounds = array<i64: 3, 40, 32>}, {pipeline_mode = #tpu.pipeline_mode<synchronous>, transform_indices = @transform_2, window_bounds = array<i64: 3, 40, 32>}, {transform_indices = @transform_3, window_bounds = array<i64: 1, 8, 32>}, {transform_indices = @transform_4, window_bounds = array<i64: 1, 8, 32>}]} {
    %cst = arith.constant 0.000000e+00 : f32
    %0 = vector.broadcast %cst : f32 to vector<8x32xf32>
    %cst_0 = arith.constant 0.000000e+00 : f32
    %1 = vector.broadcast %cst_0 : f32 to vector<8x32xf32>
    %c0 = arith.constant 0 : index
    %c0_1 = arith.constant 0 : index
    %c0_2 = arith.constant 0 : index
    %2 = vector.load %arg1[%c0, %c0_1, %c0_2] : memref<1x10x40xbf16, #tpu.memory_space<vmem>>, vector<1x8x40xbf16>
    %3 = vector.shape_cast %2 : vector<1x8x40xbf16> to vector<8x40xbf16>
    %c0_3 = arith.constant 0 : index
    %c0_4 = arith.constant 0 : index
    %c0_5 = arith.constant 0 : index
    %4 = vector.load %arg2[%c0_3, %c0_4, %c0_5] : memref<3x40x32xbf16, #tpu.memory_space<vmem>>, vector<1x40x32xbf16>
    %5 = vector.shape_cast %4 : vector<1x40x32xbf16> to vector<40x32xbf16>
    %cst_6 = arith.constant dense<0.000000e+00> : vector<8x32xf32>
    %6 = tpu.matmul %3, %5, %cst_6 {dimension_numbers = #tpu.dot_dimension_numbers<[1], [0], [0], [1], [0, 0, 1, 1], [], []>} : vector<8x40xbf16>, vector<40x32xbf16>, vector<8x32xf32> -> vector<8x32xf32>
    %7 = arith.addf %0, %6 : vector<8x32xf32>
    %c0_7 = arith.constant 0 : index
    %c0_8 = arith.constant 0 : index
    %c0_9 = arith.constant 0 : index
    %8 = vector.load %arg3[%c0_7, %c0_8, %c0_9] : memref<3x40x32xbf16, #tpu.memory_space<vmem>>, vector<1x40x32xbf16>
    %9 = vector.shape_cast %8 : vector<1x40x32xbf16> to vector<40x32xbf16>
    %cst_10 = arith.constant dense<0.000000e+00> : vector<8x32xf32>
    %10 = tpu.matmul %3, %9, %cst_10 {dimension_numbers = #tpu.dot_dimension_numbers<[1], [0], [0], [1], [0, 0, 1, 1], [], []>} : vector<8x40xbf16>, vector<40x32xbf16>, vector<8x32xf32> -> vector<8x32xf32>
    %11 = arith.addf %1, %10 : vector<8x32xf32>
    %c0_11 = arith.constant 0 : index
    %c1 = arith.constant 1 : index
    %c0_12 = arith.constant 0 : index
    %12 = vector.load %arg1[%c0_11, %c1, %c0_12] : memref<1x10x40xbf16, #tpu.memory_space<vmem>>, vector<1x8x40xbf16>
    %13 = vector.shape_cast %12 : vector<1x8x40xbf16> to vector<8x40xbf16>
    %c1_13 = arith.constant 1 : index
    %c0_14 = arith.constant 0 : index
    %c0_15 = arith.constant 0 : index
    %14 = vector.load %arg2[%c1_13, %c0_14, %c0_15] : memref<3x40x32xbf16, #tpu.memory_space<vmem>>, vector<1x40x32xbf16>
    %15 = vector.shape_cast %14 : vector<1x40x32xbf16> to vector<40x32xbf16>
    %cst_16 = arith.constant dense<0.000000e+00> : vector<8x32xf32>
    %16 = tpu.matmul %13, %15, %cst_16 {dimension_numbers = #tpu.dot_dimension_numbers<[1], [0], [0], [1], [0, 0, 1, 1], [], []>} : vector<8x40xbf16>, vector<40x32xbf16>, vector<8x32xf32> -> vector<8x32xf32>
    %17 = arith.addf %7, %16 : vector<8x32xf32>
    %c1_17 = arith.constant 1 : index
    %c0_18 = arith.constant 0 : index
    %c0_19 = arith.constant 0 : index
    %18 = vector.load %arg3[%c1_17, %c0_18, %c0_19] : memref<3x40x32xbf16, #tpu.memory_space<vmem>>, vector<1x40x32xbf16>
    %19 = vector.shape_cast %18 : vector<1x40x32xbf16> to vector<40x32xbf16>
    %cst_20 = arith.constant dense<0.000000e+00> : vector<8x32xf32>
    %20 = tpu.matmul %13, %19, %cst_20 {dimension_numbers = #tpu.dot_dimension_numbers<[1], [0], [0], [1], [0, 0, 1, 1], [], []>} : vector<8x40xbf16>, vector<40x32xbf16>, vector<8x32xf32> -> vector<8x32xf32>
    %21 = arith.addf %11, %20 : vector<8x32xf32>
    %c0_21 = arith.constant 0 : index
    %c2 = arith.constant 2 : index
    %c0_22 = arith.constant 0 : index
    %22 = vector.load %arg1[%c0_21, %c2, %c0_22] : memref<1x10x40xbf16, #tpu.memory_space<vmem>>, vector<1x8x40xbf16>
    %23 = vector.shape_cast %22 : vector<1x8x40xbf16> to vector<8x40xbf16>
    %c2_23 = arith.constant 2 : index
    %c0_24 = arith.constant 0 : index
    %c0_25 = arith.constant 0 : index
    %24 = vector.load %arg2[%c2_23, %c0_24, %c0_25] : memref<3x40x32xbf16, #tpu.memory_space<vmem>>, vector<1x40x32xbf16>
    %25 = vector.shape_cast %24 : vector<1x40x32xbf16> to vector<40x32xbf16>
    %cst_26 = arith.constant dense<0.000000e+00> : vector<8x32xf32>
    %26 = tpu.matmul %23, %25, %cst_26 {dimension_numbers = #tpu.dot_dimension_numbers<[1], [0], [0], [1], [0, 0, 1, 1], [], []>} : vector<8x40xbf16>, vector<40x32xbf16>, vector<8x32xf32> -> vector<8x32xf32>
    %27 = arith.addf %17, %26 : vector<8x32xf32>
    %c2_27 = arith.constant 2 : index
    %c0_28 = arith.constant 0 : index
    %c0_29 = arith.constant 0 : index
    %28 = vector.load %arg3[%c2_27, %c0_28, %c0_29] : memref<3x40x32xbf16, #tpu.memory_space<vmem>>, vector<1x40x32xbf16>
    %29 = vector.shape_cast %28 : vector<1x40x32xbf16> to vector<40x32xbf16>
    %cst_30 = arith.constant dense<0.000000e+00> : vector<8x32xf32>
    %30 = tpu.matmul %23, %29, %cst_30 {dimension_numbers = #tpu.dot_dimension_numbers<[1], [0], [0], [1], [0, 0, 1, 1], [], []>} : vector<8x40xbf16>, vector<40x32xbf16>, vector<8x32xf32> -> vector<8x32xf32>
    %31 = arith.addf %21, %30 : vector<8x32xf32>
    %c0_31 = arith.constant 0 : index
    %c0_32 = arith.constant 0 : index
    %c0_33 = arith.constant 0 : index
    %32 = vector.load %arg4[%c0_31, %c0_32, %c0_33] : memref<1x8x32xf32, #tpu.memory_space<vmem>>, vector<1x8x32xf32>
    %33 = vector.shape_cast %32 : vector<1x8x32xf32> to vector<8x32xf32>
    %34 = vector.shape_cast %27 : vector<8x32xf32> to vector<1x8x32xf32>
    tpu.vector_store %arg4[%c0_31, %c0_32, %c0_33], %34 {strides = array<i32>} : memref<1x8x32xf32, #tpu.memory_space<vmem>>, vector<1x8x32xf32>,
    %c0_34 = arith.constant 0 : index
    %c0_35 = arith.constant 0 : index
    %c0_36 = arith.constant 0 : index
    %35 = vector.load %arg5[%c0_34, %c0_35, %c0_36] : memref<1x8x32xf32, #tpu.memory_space<vmem>>, vector<1x8x32xf32>
    %36 = vector.shape_cast %35 : vector<1x8x32xf32> to vector<8x32xf32>
    %37 = vector.shape_cast %31 : vector<8x32xf32> to vector<1x8x32xf32>
    tpu.vector_store %arg5[%c0_34, %c0_35, %c0_36], %37 {strides = array<i32>} : memref<1x8x32xf32, #tpu.memory_space<vmem>>, vector<1x8x32xf32>,
    return
  }
  func.func @transform_0(%arg0: i32) -> (i32, i32, i32) {
    %c0_i32 = arith.constant 0 : i32
    %c0_i32_0 = arith.constant 0 : i32
    %c0_i32_1 = arith.constant 0 : i32
    return %arg0, %c0_i32, %c0_i32_0 : i32, i32, i32
  }
  func.func @transform_1(%arg0: i32) -> (i32, i32, i32) {
    %c0_i32 = arith.constant 0 : i32
    %c0_i32_0 = arith.constant 0 : i32
    %c0_i32_1 = arith.constant 0 : i32
    %c0_i32_2 = arith.constant 0 : i32
    return %c0_i32, %c0_i32_0, %c0_i32_1 : i32, i32, i32
  }
  func.func @transform_2(%arg0: i32) -> (i32, i32, i32) {
    %c0_i32 = arith.constant 0 : i32
    %c0_i32_0 = arith.constant 0 : i32
    %c0_i32_1 = arith.constant 0 : i32
    %c0_i32_2 = arith.constant 0 : i32
    return %c0_i32, %c0_i32_0, %c0_i32_1 : i32, i32, i32
  }
  func.func @transform_3(%arg0: i32) -> (i32, i32, i32) {
    %c0_i32 = arith.constant 0 : i32
    %c0_i32_0 = arith.constant 0 : i32
    %c0_i32_1 = arith.constant 0 : i32
    return %arg0, %c0_i32, %c0_i32_0 : i32, i32, i32
  }
  func.func @transform_4(%arg0: i32) -> (i32, i32, i32) {
    %c0_i32 = arith.constant 0 : i32
    %c0_i32_0 = arith.constant 0 : i32
    %c0_i32_1 = arith.constant 0 : i32
    return %arg0, %c0_i32, %c0_i32_0 : i32, i32, i32
  }
}

module attributes {stable_mosaic.version = 11 : i64} {
  func.func @_bn_stats_up_kernel(%arg0: i32, %arg1: i32, %arg2: memref<1x16x64xf32, #tpu.memory_space<vmem>>, %arg3: memref<1x8x32xf32, #tpu.memory_space<vmem>>, %arg4: memref<16x8xf32, #tpu.memory_space<vmem>>, %arg5: memref<32x64xf32, #tpu.memory_space<vmem>>, %arg6: memref<1x2x64xf32, #tpu.memory_space<vmem>>) attributes {dimension_semantics = [#tpu.dimension_semantics<parallel>, #tpu.dimension_semantics<arbitrary>], iteration_bounds = array<i64: 2, 1>, scalar_prefetch = 0 : i64, scratch_operands = 0 : i64, tpu.core_type = #tpu.core_type<tc>, window_params = [{transform_indices = @transform_0, window_bounds = array<i64: 1, 16, 64>}, {transform_indices = @transform_1, window_bounds = array<i64: 1, 8, 32>}, {pipeline_mode = #tpu.pipeline_mode<synchronous>, transform_indices = @transform_2, window_bounds = array<i64: 16, 8>}, {pipeline_mode = #tpu.pipeline_mode<synchronous>, transform_indices = @transform_3, window_bounds = array<i64: 32, 64>}, {transform_indices = @transform_4, window_bounds = array<i64: 1, 2, 64>}]} {
    %c0 = arith.constant 0 : index
    %c0_0 = arith.constant 0 : index
    %0 = vector.load %arg4[%c0, %c0_0] : memref<16x8xf32, #tpu.memory_space<vmem>>, vector<16x8xf32>
    %c0_1 = arith.constant 0 : index
    %c0_2 = arith.constant 0 : index
    %c0_3 = arith.constant 0 : index
    %1 = vector.load %arg3[%c0_1, %c0_2, %c0_3] : memref<1x8x32xf32, #tpu.memory_space<vmem>>, vector<1x8x32xf32>
    %2 = vector.shape_cast %1 : vector<1x8x32xf32> to vector<8x32xf32>
    %c0_4 = arith.constant 0 : index
    %c0_5 = arith.constant 0 : index
    %3 = vector.load %arg5[%c0_4, %c0_5] : memref<32x64xf32, #tpu.memory_space<vmem>>, vector<32x64xf32>
    %cst = arith.constant dense<0.000000e+00> : vector<8x64xf32>
    %4 = tpu.matmul %2, %3, %cst {dimension_numbers = #tpu.dot_dimension_numbers<[1], [0], [0], [1], [0, 0, 1, 1], [], []>} : vector<8x32xf32>, vector<32x64xf32>, vector<8x64xf32> -> vector<8x64xf32>
    %cst_6 = arith.constant dense<0.000000e+00> : vector<16x64xf32>
    %5 = tpu.matmul %0, %4, %cst_6 {dimension_numbers = #tpu.dot_dimension_numbers<[1], [0], [0], [1], [0, 0, 1, 1], [], []>} : vector<16x8xf32>, vector<8x64xf32>, vector<16x64xf32> -> vector<16x64xf32>
    %c0_7 = arith.constant 0 : index
    %c0_8 = arith.constant 0 : index
    %c0_9 = arith.constant 0 : index
    %6 = vector.load %arg2[%c0_7, %c0_8, %c0_9] : memref<1x16x64xf32, #tpu.memory_space<vmem>>, vector<1x16x64xf32>
    %7 = vector.shape_cast %6 : vector<1x16x64xf32> to vector<16x64xf32>
    %8 = arith.addf %7, %5 : vector<16x64xf32>
    %cst_10 = arith.constant dense<0.000000e+00> : vector<64xf32>
    %9 = vector.multi_reduction <add>, %8, %cst_10 [0] : vector<16x64xf32> to vector<64xf32>
    %10 = vector.shape_cast %9 : vector<64xf32> to vector<1x64xf32>
    %11 = arith.mulf %8, %8 : vector<16x64xf32>
    %cst_11 = arith.constant dense<0.000000e+00> : vector<64xf32>
    %12 = vector.multi_reduction <add>, %11, %cst_11 [0] : vector<16x64xf32> to vector<64xf32>
    %13 = vector.shape_cast %12 : vector<64xf32> to vector<1x64xf32>
    %14 = tpu.concatenate %10, %13 in 0 : vector<1x64xf32>, vector<1x64xf32> -> vector<2x64xf32>
    %c0_i32 = arith.constant 0 : i32
    %15 = arith.cmpi eq, %arg1, %c0_i32 : i32
    %16 = arith.extui %15 : i1 to i32
    %c0_i32_12 = arith.constant 0 : i32
    %17 = arith.cmpi ne, %16, %c0_i32_12 : i32
    scf.if %17 {
      %cst_19 = arith.constant 0.000000e+00 : f32
      %24 = vector.broadcast %cst_19 : f32 to vector<2x64xf32>
      %c0_20 = arith.constant 0 : index
      %c0_21 = arith.constant 0 : index
      %c0_22 = arith.constant 0 : index
      %25 = vector.load %arg6[%c0_20, %c0_21, %c0_22] : memref<1x2x64xf32, #tpu.memory_space<vmem>>, vector<1x2x64xf32>
      %26 = vector.shape_cast %25 : vector<1x2x64xf32> to vector<2x64xf32>
      %27 = vector.shape_cast %24 : vector<2x64xf32> to vector<1x2x64xf32>
      tpu.vector_store %arg6[%c0_20, %c0_21, %c0_22], %27 {strides = array<i32>} : memref<1x2x64xf32, #tpu.memory_space<vmem>>, vector<1x2x64xf32>,
    } else {
    }
    %c0_13 = arith.constant 0 : index
    %c0_14 = arith.constant 0 : index
    %c0_15 = arith.constant 0 : index
    %18 = vector.load %arg6[%c0_13, %c0_14, %c0_15] : memref<1x2x64xf32, #tpu.memory_space<vmem>>, vector<1x2x64xf32>
    %19 = vector.shape_cast %18 : vector<1x2x64xf32> to vector<2x64xf32>
    %20 = arith.addf %19, %14 : vector<2x64xf32>
    %c0_16 = arith.constant 0 : index
    %c0_17 = arith.constant 0 : index
    %c0_18 = arith.constant 0 : index
    %21 = vector.load %arg6[%c0_16, %c0_17, %c0_18] : memref<1x2x64xf32, #tpu.memory_space<vmem>>, vector<1x2x64xf32>
    %22 = vector.shape_cast %21 : vector<1x2x64xf32> to vector<2x64xf32>
    %23 = vector.shape_cast %20 : vector<2x64xf32> to vector<1x2x64xf32>
    tpu.vector_store %arg6[%c0_16, %c0_17, %c0_18], %23 {strides = array<i32>} : memref<1x2x64xf32, #tpu.memory_space<vmem>>, vector<1x2x64xf32>,
    return
  }
  func.func @transform_0(%arg0: i32, %arg1: i32) -> (i32, i32, i32) {
    %c0_i32 = arith.constant 0 : i32
    %c0_i32_0 = arith.constant 0 : i32
    return %arg0, %arg1, %c0_i32 : i32, i32, i32
  }
  func.func @transform_1(%arg0: i32, %arg1: i32) -> (i32, i32, i32) {
    %c0_i32 = arith.constant 0 : i32
    %c0_i32_0 = arith.constant 0 : i32
    return %arg0, %arg1, %c0_i32 : i32, i32, i32
  }
  func.func @transform_2(%arg0: i32, %arg1: i32) -> (i32, i32) {
    %c0_i32 = arith.constant 0 : i32
    %c0_i32_0 = arith.constant 0 : i32
    %c0_i32_1 = arith.constant 0 : i32
    return %c0_i32, %c0_i32_0 : i32, i32
  }
  func.func @transform_3(%arg0: i32, %arg1: i32) -> (i32, i32) {
    %c0_i32 = arith.constant 0 : i32
    %c0_i32_0 = arith.constant 0 : i32
    %c0_i32_1 = arith.constant 0 : i32
    return %c0_i32, %c0_i32_0 : i32, i32
  }
  func.func @transform_4(%arg0: i32, %arg1: i32) -> (i32, i32, i32) {
    %c0_i32 = arith.constant 0 : i32
    %c0_i32_0 = arith.constant 0 : i32
    %c0_i32_1 = arith.constant 0 : i32
    return %arg0, %c0_i32, %c0_i32_0 : i32, i32, i32
  }
}

module attributes {stable_mosaic.version = 11 : i64} {
  func.func @_bn_norm_up_kernel(%arg0: i32, %arg1: i32, %arg2: memref<1x16x64xf32, #tpu.memory_space<vmem>>, %arg3: memref<1x8x32xf32, #tpu.memory_space<vmem>>, %arg4: memref<16x8xf32, #tpu.memory_space<vmem>>, %arg5: memref<32x64xf32, #tpu.memory_space<vmem>>, %arg6: memref<1x64xf32, #tpu.memory_space<vmem>>, %arg7: memref<1x64xf32, #tpu.memory_space<vmem>>, %arg8: memref<1x16x64xf32, #tpu.memory_space<vmem>>) attributes {dimension_semantics = [#tpu.dimension_semantics<parallel>, #tpu.dimension_semantics<parallel>], iteration_bounds = array<i64: 2, 1>, scalar_prefetch = 0 : i64, scratch_operands = 0 : i64, tpu.core_type = #tpu.core_type<tc>, window_params = [{transform_indices = @transform_0, window_bounds = array<i64: 1, 16, 64>}, {transform_indices = @transform_1, window_bounds = array<i64: 1, 8, 32>}, {pipeline_mode = #tpu.pipeline_mode<synchronous>, transform_indices = @transform_2, window_bounds = array<i64: 16, 8>}, {pipeline_mode = #tpu.pipeline_mode<synchronous>, transform_indices = @transform_3, window_bounds = array<i64: 32, 64>}, {pipeline_mode = #tpu.pipeline_mode<synchronous>, transform_indices = @transform_4, window_bounds = array<i64: 1, 64>}, {pipeline_mode = #tpu.pipeline_mode<synchronous>, transform_indices = @transform_5, window_bounds = array<i64: 1, 64>}, {transform_indices = @transform_6, window_bounds = array<i64: 1, 16, 64>}]} {
    %c0 = arith.constant 0 : index
    %c0_0 = arith.constant 0 : index
    %0 = vector.load %arg4[%c0, %c0_0] : memref<16x8xf32, #tpu.memory_space<vmem>>, vector<16x8xf32>
    %c0_1 = arith.constant 0 : index
    %c0_2 = arith.constant 0 : index
    %c0_3 = arith.constant 0 : index
    %1 = vector.load %arg3[%c0_1, %c0_2, %c0_3] : memref<1x8x32xf32, #tpu.memory_space<vmem>>, vector<1x8x32xf32>
    %2 = vector.shape_cast %1 : vector<1x8x32xf32> to vector<8x32xf32>
    %c0_4 = arith.constant 0 : index
    %c0_5 = arith.constant 0 : index
    %3 = vector.load %arg5[%c0_4, %c0_5] : memref<32x64xf32, #tpu.memory_space<vmem>>, vector<32x64xf32>
    %cst = arith.constant dense<0.000000e+00> : vector<8x64xf32>
    %4 = tpu.matmul %2, %3, %cst {dimension_numbers = #tpu.dot_dimension_numbers<[1], [0], [0], [1], [0, 0, 1, 1], [], []>} : vector<8x32xf32>, vector<32x64xf32>, vector<8x64xf32> -> vector<8x64xf32>
    %cst_6 = arith.constant dense<0.000000e+00> : vector<16x64xf32>
    %5 = tpu.matmul %0, %4, %cst_6 {dimension_numbers = #tpu.dot_dimension_numbers<[1], [0], [0], [1], [0, 0, 1, 1], [], []>} : vector<16x8xf32>, vector<8x64xf32>, vector<16x64xf32> -> vector<16x64xf32>
    %c0_7 = arith.constant 0 : index
    %c0_8 = arith.constant 0 : index
    %c0_9 = arith.constant 0 : index
    %6 = vector.load %arg2[%c0_7, %c0_8, %c0_9] : memref<1x16x64xf32, #tpu.memory_space<vmem>>, vector<1x16x64xf32>
    %7 = vector.shape_cast %6 : vector<1x16x64xf32> to vector<16x64xf32>
    %8 = arith.addf %7, %5 : vector<16x64xf32>
    %c0_10 = arith.constant 0 : index
    %c0_11 = arith.constant 0 : index
    %9 = vector.load %arg6[%c0_10, %c0_11] : memref<1x64xf32, #tpu.memory_space<vmem>>, vector<1x64xf32>
    %10 = vector.broadcast %9 : vector<1x64xf32> to vector<16x64xf32>
    %11 = arith.mulf %8, %10 : vector<16x64xf32>
    %c0_12 = arith.constant 0 : index
    %c0_13 = arith.constant 0 : index
    %12 = vector.load %arg7[%c0_12, %c0_13] : memref<1x64xf32, #tpu.memory_space<vmem>>, vector<1x64xf32>
    %13 = vector.broadcast %12 : vector<1x64xf32> to vector<16x64xf32>
    %14 = arith.addf %11, %13 : vector<16x64xf32>
    %c0_14 = arith.constant 0 : index
    %c0_15 = arith.constant 0 : index
    %c0_16 = arith.constant 0 : index
    %15 = vector.load %arg8[%c0_14, %c0_15, %c0_16] : memref<1x16x64xf32, #tpu.memory_space<vmem>>, vector<1x16x64xf32>
    %16 = vector.shape_cast %15 : vector<1x16x64xf32> to vector<16x64xf32>
    %17 = vector.shape_cast %14 : vector<16x64xf32> to vector<1x16x64xf32>
    tpu.vector_store %arg8[%c0_14, %c0_15, %c0_16], %17 {strides = array<i32>} : memref<1x16x64xf32, #tpu.memory_space<vmem>>, vector<1x16x64xf32>,
    return
  }
  func.func @transform_0(%arg0: i32, %arg1: i32) -> (i32, i32, i32) {
    %c0_i32 = arith.constant 0 : i32
    %c0_i32_0 = arith.constant 0 : i32
    return %arg0, %arg1, %c0_i32 : i32, i32, i32
  }
  func.func @transform_1(%arg0: i32, %arg1: i32) -> (i32, i32, i32) {
    %c0_i32 = arith.constant 0 : i32
    %c0_i32_0 = arith.constant 0 : i32
    return %arg0, %arg1, %c0_i32 : i32, i32, i32
  }
  func.func @transform_2(%arg0: i32, %arg1: i32) -> (i32, i32) {
    %c0_i32 = arith.constant 0 : i32
    %c0_i32_0 = arith.constant 0 : i32
    %c0_i32_1 = arith.constant 0 : i32
    return %c0_i32, %c0_i32_0 : i32, i32
  }
  func.func @transform_3(%arg0: i32, %arg1: i32) -> (i32, i32) {
    %c0_i32 = arith.constant 0 : i32
    %c0_i32_0 = arith.constant 0 : i32
    %c0_i32_1 = arith.constant 0 : i32
    return %c0_i32, %c0_i32_0 : i32, i32
  }
  func.func @transform_4(%arg0: i32, %arg1: i32) -> (i32, i32) {
    %c0_i32 = arith.constant 0 : i32
    %c0_i32_0 = arith.constant 0 : i32
    %c0_i32_1 = arith.constant 0 : i32
    return %c0_i32, %c0_i32_0 : i32, i32
  }
  func.func @transform_5(%arg0: i32, %arg1: i32) -> (i32, i32) {
    %c0_i32 = arith.constant 0 : i32
    %c0_i32_0 = arith.constant 0 : i32
    %c0_i32_1 = arith.constant 0 : i32
    return %c0_i32, %c0_i32_0 : i32, i32
  }
  func.func @transform_6(%arg0: i32, %arg1: i32) -> (i32, i32, i32) {
    %c0_i32 = arith.constant 0 : i32
    %c0_i32_0 = arith.constant 0 : i32
    return %arg0, %arg1, %c0_i32 : i32, i32, i32
  }
}

module attributes {stable_mosaic.version = 11 : i64} {
  func.func @_bn_stats_kernel(%arg0: i32, %arg1: i32, %arg2: memref<1x8x32xf32, #tpu.memory_space<vmem>>, %arg3: memref<1x2x32xf32, #tpu.memory_space<vmem>>) attributes {dimension_semantics = [#tpu.dimension_semantics<parallel>, #tpu.dimension_semantics<arbitrary>], iteration_bounds = array<i64: 2, 1>, scalar_prefetch = 0 : i64, scratch_operands = 0 : i64, tpu.core_type = #tpu.core_type<tc>, window_params = [{transform_indices = @transform_0, window_bounds = array<i64: 1, 8, 32>}, {transform_indices = @transform_1, window_bounds = array<i64: 1, 2, 32>}]} {
    %c0 = arith.constant 0 : index
    %c0_0 = arith.constant 0 : index
    %c0_1 = arith.constant 0 : index
    %0 = vector.load %arg2[%c0, %c0_0, %c0_1] : memref<1x8x32xf32, #tpu.memory_space<vmem>>, vector<1x8x32xf32>
    %1 = vector.shape_cast %0 : vector<1x8x32xf32> to vector<8x32xf32>
    %cst = arith.constant dense<0.000000e+00> : vector<32xf32>
    %2 = vector.multi_reduction <add>, %1, %cst [0] : vector<8x32xf32> to vector<32xf32>
    %3 = vector.shape_cast %2 : vector<32xf32> to vector<1x32xf32>
    %4 = arith.mulf %1, %1 : vector<8x32xf32>
    %cst_2 = arith.constant dense<0.000000e+00> : vector<32xf32>
    %5 = vector.multi_reduction <add>, %4, %cst_2 [0] : vector<8x32xf32> to vector<32xf32>
    %6 = vector.shape_cast %5 : vector<32xf32> to vector<1x32xf32>
    %7 = tpu.concatenate %3, %6 in 0 : vector<1x32xf32>, vector<1x32xf32> -> vector<2x32xf32>
    %c0_i32 = arith.constant 0 : i32
    %8 = arith.cmpi eq, %arg1, %c0_i32 : i32
    %9 = arith.extui %8 : i1 to i32
    %c0_i32_3 = arith.constant 0 : i32
    %10 = arith.cmpi ne, %9, %c0_i32_3 : i32
    scf.if %10 {
      %cst_10 = arith.constant 0.000000e+00 : f32
      %17 = vector.broadcast %cst_10 : f32 to vector<2x32xf32>
      %c0_11 = arith.constant 0 : index
      %c0_12 = arith.constant 0 : index
      %c0_13 = arith.constant 0 : index
      %18 = vector.load %arg3[%c0_11, %c0_12, %c0_13] : memref<1x2x32xf32, #tpu.memory_space<vmem>>, vector<1x2x32xf32>
      %19 = vector.shape_cast %18 : vector<1x2x32xf32> to vector<2x32xf32>
      %20 = vector.shape_cast %17 : vector<2x32xf32> to vector<1x2x32xf32>
      tpu.vector_store %arg3[%c0_11, %c0_12, %c0_13], %20 {strides = array<i32>} : memref<1x2x32xf32, #tpu.memory_space<vmem>>, vector<1x2x32xf32>,
    } else {
    }
    %c0_4 = arith.constant 0 : index
    %c0_5 = arith.constant 0 : index
    %c0_6 = arith.constant 0 : index
    %11 = vector.load %arg3[%c0_4, %c0_5, %c0_6] : memref<1x2x32xf32, #tpu.memory_space<vmem>>, vector<1x2x32xf32>
    %12 = vector.shape_cast %11 : vector<1x2x32xf32> to vector<2x32xf32>
    %13 = arith.addf %12, %7 : vector<2x32xf32>
    %c0_7 = arith.constant 0 : index
    %c0_8 = arith.constant 0 : index
    %c0_9 = arith.constant 0 : index
    %14 = vector.load %arg3[%c0_7, %c0_8, %c0_9] : memref<1x2x32xf32, #tpu.memory_space<vmem>>, vector<1x2x32xf32>
    %15 = vector.shape_cast %14 : vector<1x2x32xf32> to vector<2x32xf32>
    %16 = vector.shape_cast %13 : vector<2x32xf32> to vector<1x2x32xf32>
    tpu.vector_store %arg3[%c0_7, %c0_8, %c0_9], %16 {strides = array<i32>} : memref<1x2x32xf32, #tpu.memory_space<vmem>>, vector<1x2x32xf32>,
    return
  }
  func.func @transform_0(%arg0: i32, %arg1: i32) -> (i32, i32, i32) {
    %c0_i32 = arith.constant 0 : i32
    %c0_i32_0 = arith.constant 0 : i32
    return %arg0, %arg1, %c0_i32 : i32, i32, i32
  }
  func.func @transform_1(%arg0: i32, %arg1: i32) -> (i32, i32, i32) {
    %c0_i32 = arith.constant 0 : i32
    %c0_i32_0 = arith.constant 0 : i32
    %c0_i32_1 = arith.constant 0 : i32
    return %arg0, %c0_i32, %c0_i32_0 : i32, i32, i32
  }
}

module attributes {stable_mosaic.version = 11 : i64} {
  func.func @_bn_norm_kernel(%arg0: i32, %arg1: i32, %arg2: memref<1x8x32xf32, #tpu.memory_space<vmem>>, %arg3: memref<1x32xf32, #tpu.memory_space<vmem>>, %arg4: memref<1x32xf32, #tpu.memory_space<vmem>>, %arg5: memref<1x8x32xf32, #tpu.memory_space<vmem>>) attributes {dimension_semantics = [#tpu.dimension_semantics<parallel>, #tpu.dimension_semantics<parallel>], iteration_bounds = array<i64: 2, 1>, scalar_prefetch = 0 : i64, scratch_operands = 0 : i64, tpu.core_type = #tpu.core_type<tc>, window_params = [{transform_indices = @transform_0, window_bounds = array<i64: 1, 8, 32>}, {pipeline_mode = #tpu.pipeline_mode<synchronous>, transform_indices = @transform_1, window_bounds = array<i64: 1, 32>}, {pipeline_mode = #tpu.pipeline_mode<synchronous>, transform_indices = @transform_2, window_bounds = array<i64: 1, 32>}, {transform_indices = @transform_3, window_bounds = array<i64: 1, 8, 32>}]} {
    %c0 = arith.constant 0 : index
    %c0_0 = arith.constant 0 : index
    %c0_1 = arith.constant 0 : index
    %0 = vector.load %arg2[%c0, %c0_0, %c0_1] : memref<1x8x32xf32, #tpu.memory_space<vmem>>, vector<1x8x32xf32>
    %1 = vector.shape_cast %0 : vector<1x8x32xf32> to vector<8x32xf32>
    %c0_2 = arith.constant 0 : index
    %c0_3 = arith.constant 0 : index
    %2 = vector.load %arg3[%c0_2, %c0_3] : memref<1x32xf32, #tpu.memory_space<vmem>>, vector<1x32xf32>
    %3 = vector.broadcast %2 : vector<1x32xf32> to vector<8x32xf32>
    %4 = arith.mulf %1, %3 : vector<8x32xf32>
    %c0_4 = arith.constant 0 : index
    %c0_5 = arith.constant 0 : index
    %5 = vector.load %arg4[%c0_4, %c0_5] : memref<1x32xf32, #tpu.memory_space<vmem>>, vector<1x32xf32>
    %6 = vector.broadcast %5 : vector<1x32xf32> to vector<8x32xf32>
    %7 = arith.addf %4, %6 : vector<8x32xf32>
    %c0_6 = arith.constant 0 : index
    %c0_7 = arith.constant 0 : index
    %c0_8 = arith.constant 0 : index
    %8 = vector.load %arg5[%c0_6, %c0_7, %c0_8] : memref<1x8x32xf32, #tpu.memory_space<vmem>>, vector<1x8x32xf32>
    %9 = vector.shape_cast %8 : vector<1x8x32xf32> to vector<8x32xf32>
    %10 = vector.shape_cast %7 : vector<8x32xf32> to vector<1x8x32xf32>
    tpu.vector_store %arg5[%c0_6, %c0_7, %c0_8], %10 {strides = array<i32>} : memref<1x8x32xf32, #tpu.memory_space<vmem>>, vector<1x8x32xf32>,
    return
  }
  func.func @transform_0(%arg0: i32, %arg1: i32) -> (i32, i32, i32) {
    %c0_i32 = arith.constant 0 : i32
    %c0_i32_0 = arith.constant 0 : i32
    return %arg0, %arg1, %c0_i32 : i32, i32, i32
  }
  func.func @transform_1(%arg0: i32, %arg1: i32) -> (i32, i32) {
    %c0_i32 = arith.constant 0 : i32
    %c0_i32_0 = arith.constant 0 : i32
    %c0_i32_1 = arith.constant 0 : i32
    return %c0_i32, %c0_i32_0 : i32, i32
  }
  func.func @transform_2(%arg0: i32, %arg1: i32) -> (i32, i32) {
    %c0_i32 = arith.constant 0 : i32
    %c0_i32_0 = arith.constant 0 : i32
    %c0_i32_1 = arith.constant 0 : i32
    return %c0_i32, %c0_i32_0 : i32, i32
  }
  func.func @transform_3(%arg0: i32, %arg1: i32) -> (i32, i32, i32) {
    %c0_i32 = arith.constant 0 : i32
    %c0_i32_0 = arith.constant 0 : i32
    return %arg0, %arg1, %c0_i32 : i32, i32, i32
  }
}

</mosaic_0001>

<bundles_post_ra>
// kernel: conv_bn_forward.6
= control target key start
LH: loop header
LB: loop body
LE: loop exit
PB: predicated region body
PF: predicated region fallthrough
CT: control target
= control target key end

     0   :  { %s573_s9 = smov 0   ;;  %s630_s0 = inlined_call_operand.vmem [shape: bf16[2,18,36], index: 0, kind: input, shape index: {}]   ;;  %s631_s1 = inlined_call_operand.vmem [shape: bf16[3,36,64], index: 1, kind: input, shape index: {}]   ;;  %s632_s2 = inlined_call_operand.vmem [shape: f32[2,16,64], index: 2, kind: output, shape index: {}]  }
   0x1 LB: > { %s441_s10 = sadd.s32 4294967295, %s554_s9   ;;  %p445_p0 = scmp.ge.s32.totalorder %s554_s9, 1  ;;  %s554_s9 = sphi %s573_s9, %s12_s9  }
   0x2   : > { %p112_p1 = scmp.lt.s32.totalorder %s554_s9, 3 }
   0x4   : > { %p113_p2 = pnand %p445_p0, %p112_p1 }
   0x5   : > { %v536_v0 = vld [vmem:[%s631_s1] sm:$0xff] (!%p113_p2)   ;;  %v556_v1 = vmov (!%p113_p2), 0.0   ;;  %v537_v2 = vld [vmem:[%s631_s1 + $0x8] sm:$0xff] (!%p113_p2)   ;;  %v538_v3 = vld [vmem:[%s631_s1 + $0x10] ss:$0 sps:$4 sm:$0x33] (!%p113_p2)  }
   0x6   : > { %116 = sbr.rel (%p113_p2) target bundleno = 249 (0xf9), region = 28  ;;  %499 = vmatprep.subr.bf16.mxu0 (!%p113_p2), %v556_v1  ;;  %489 = vmatprep.subr.bf16.mxu1 (!%p113_p2), %v556_v1  ;;  %v539_v4 = vld [vmem:[%s631_s1 + $0x14] sm:$0xff] (!%p113_p2)   ;;  %p134_p3 = scmp.lt.s32.totalorder (!%p113_p2), %s441_s10, 1  ;;  %vm199_vm0 = vcmask (!%p113_p2), 1041408   ;;  %vm557_vm1 = vmmov (!%p113_p2), 0   ;;  %v543_v5 = vld [vmem:[%s631_s1 + $0x1c] sm:$0xff] (!%p113_p2)  }
   0x7   : > { %500 = vmatpush3.bf16.msra.mxu0 (!%p113_p2), %v536_v0  ;;  %490 = vmatpush3.bf16.msra.mxu1 (!%p113_p2), %v539_v4  ;;  %v262_v6 = vsel (!%p113_p2), %vm199_vm0, %v538_v3, 0  ;;  %v545_v7 = vld [vmem:[%s631_s1 + $0x24] ss:$0 sps:$4 sm:$0x33] (!%p113_p2)   ;;  %vm195_vm2 = vcmask (!%p113_p2), 293888   ;;  %v542_v10 = vld [vmem:[%s631_s1 + $0x28] sm:$0xff] (!%p113_p2)  }
   0x8   : > { %501 = vmatprep.subr.bf16.mxu0 (!%p113_p2), %v556_v1  ;;  %505 = vmatprep.mubr.msk.bf16.mxu0 (!%p113_p2), %vm557_vm1, %v556_v1  ;;  %v201_v13 = vsel (!%p113_p2), %vm199_vm0, %v545_v7, 0  ;;  %v544_v18 = vld [vmem:[%s631_s1 + $0x30] sm:$0xff] (!%p113_p2)   ;;  %v546_v20 = vld [vmem:[%s631_s1 + $0x38] ss:$0 sps:$4 sm:$0x33] (!%p113_p2)   ;;  %vm315_vm4 = vcmask (!%p113_p2), 1046528  }
   0x9   : > { %491 = vmatprep.subr.bf16.mxu1 (!%p113_p2), %v556_v1  ;;  %495 = vmatprep.mubr.msk.bf16.mxu1 (!%p113_p2), %vm557_vm1, %v556_v1  ;;  %vm167_vm3 = vsmask.f32 (!%p113_p2), 7424  ;;  %v338_v26 = vsel (!%p113_p2), %vm199_vm0, %v546_v20, 0  ;;  %vm383_vm5 = vcmask (!%p113_p2), 523264  }
   0xb   : > { %502 = vmatpush3.bf16.msra.mxu0 (!%p113_p2), %v537_v2  ;;  %492 = vmatpush3.bf16.msra.mxu1 (!%p113_p2), %v543_v5 }
   0xc   : > { %503 = vmatprep.subr.bf16.mxu0 (!%p113_p2), %v556_v1  ;;  %493 = vmatprep.subr.bf16.mxu1 (!%p113_p2), %v556_v1 }
   0xd   : > { %s634_s10 = smov (!%p134_p3, %s441_s10), 1 }
   0xe   : > { %s525_s21 = smul.u32 12, %s634_s10  ;;  %s476_s5 = sshll.u32 %s634_s10, 4 }
   0xf   : > { %504 = vmatpush3.bf16.msra.mxu0 %v262_v6  ;;  %494 = vmatpush3.bf16.msra.mxu1 %v201_v13  ;;  %s143_s8 = scalar_lea.vmem %s632_s2, %s476_s5 }
  0x10   : > { %s138_s26 = scalar_lea.vmem %s630_s0, %s525_s21  ;;  %509 = vmatprep.subr.bf16.mxu0 %v556_v1 }
  0x11   : > { %v145_v8 = vld [vmem:[%s138_s26] sm:$0xf]  ;;  %v146_v9 = vld [vmem:[%s138_s26 + $0x4] sm:$0xf] }
  0x12   : > { %v454_v11 = vcombine.low %v145_v8, %v146_v9  ;;  %v305_v12 = vld [vmem:[%s138_s26] sm:$0xe]  ;;  %v547_v14 = vld [vmem:[%s138_s26 + $0x8] ss:$0 sps:$4 sm:$0x11]  }
  0x13   : > { %v469_v17 = vcombine.low %v305_v12, %v146_v9  ;;  %v176_v19 = vshll.u32 %v547_v14, 16  ;;  %v317_v25 = vrot.slane %v547_v14, 1 }
  0x14   : > { %506 = vmatmul.mubr.msk.bf16.vlgmr.msra.gmra.mrb[0].mxu0 %vm195_vm2, %v454_v11  ;;  %v169_v15 = vshrl.u32 %v454_v11, 16  ;;  %v171_v16 = vshll.u32 %v454_v11, 16 }
  0x15   : > { %510 = vmatpush3.bf16.msra.mxu0 %v542_v10  ;;  %515 = vmatprep.mubr.msk.bf16.mxu0 %vm557_vm1, %v556_v1  ;;  %v178_v22 = vrot.slane %v176_v19, 1  ;;  %v316_v24 = vrot.slane %v469_v17, 1 }
  0x16   : > { %511 = vmatprep.subr.bf16.mxu0 %v556_v1  ;;  %v173_v21 = vrot.slane %v171_v16, 1 }
  0x17   : > { %v318_v28 = vsel %vm315_vm4, %v316_v24, %v317_v25 }
  0x18   : > { %v174_v23 = vor.u32 %v173_v21, %v169_v15 }
  0x19   : > { %512 = vmatpush3.bf16.msra.mxu0 %v544_v18 }
  0x1a   : > { %513 = vmatprep.subr.bf16.mxu0 %v556_v1  ;;  %v179_v27 = vsel %vm167_vm3, %v174_v23, %v178_v22 }
  0x1b   : > { %496 = vmatmul.mubr.msk.bf16.vlgmr.msra.gmra.mrb[0].mxu1 %vm195_vm2, %v179_v27 }
  0x1d   : > { %514 = vmatpush3.bf16.msra.mxu0 %v338_v26 }
  0x20   : > { %516 = vmatmul.mubr.msk.bf16.vlgmr.msra.gmra.mrb[0].mxu0 %vm195_vm2, %v318_v28 }
  0xee   : > { %v237_v29 = vpop.f32.mrb[0].mxu1 }
  0xef   : > { %v497_v30 = vpop.f32.mrb[1].mxu1 }
  0xf0   : > { %v240_v31 = vpop.f32.mrb[2].mxu1 }
  0xf1   : > { %v498_v32 = vpop.f32.mrb[3].mxu1 }
  0xf3   : > { %v374_v33 = vpop.f32.mrb[0].mxu0 }
  0xf4   : > { %v519_v34 = vadd.f32 %v374_v33, %v237_v29  ;;  %v517_v35 = vpop.f32.mrb[1].mxu0 }
  0xf5   : > { %v377_v36 = vpop.f32.mrb[2].mxu0 }
  0xf6   : > { %384 = vst.msk [vmem:[%s143_s8] sm:$0xff] %vm383_vm5, %v519_v34  ;;  %v520_v37 = vadd.f32 %v377_v36, %v240_v31  ;;  %v518_v38 = vpop.f32.mrb[3].mxu0 }
  0xf8   : > { %385 = vst.msk [vmem:[%s143_s8 + $0x8] sm:$0xff] %vm383_vm5, %v520_v37 }
  0xf9 PF: > { %s12_s9 = sadd.s32 1, %s554_s9  }
  0xfa   : > { %p9_p4 = scmp.ge.s32.totalorder %s12_s9, 4  }
  0xfc   :  { %11 = sbr.rel (!%p9_p4) target bundleno = 1 (0x1), region = 60 }

// kernel: conv_bn_forward.7
= control target key start
LH: loop header
LB: loop body
LE: loop exit
PB: predicated region body
PF: predicated region fallthrough
CT: control target
= control target key end

     0   :  { %s932_s15 = smov 0   ;;  %s1058_s0 = inlined_call_operand.vmem [shape: bf16[2,10,40], index: 0, kind: input, shape index: {}]   ;;  %s1059_s1 = inlined_call_operand.vmem [shape: bf16[3,40,32], index: 1, kind: input, shape index: {}]   ;;  %s1060_s2 = inlined_call_operand.vmem [shape: bf16[3,40,32], index: 2, kind: input, shape index: {}]   ;;  %s1061_s3 = inlined_call_operand.vmem [shape: f32[2,8,32], index: 3, kind: output, shape index: {0}]   ;;  %s1062_s4 = inlined_call_operand.vmem [shape: f32[2,8,32], index: 4, kind: output, shape index: {1}]  }
   0x1 LB: > { %s709_s16 = sadd.s32 4294967295, %s903_s15   ;;  %p713_p0 = scmp.ge.s32.totalorder %s903_s15, 1  ;;  %s903_s15 = sphi %s932_s15, %s15_s15  }
   0x2   : > { %p165_p1 = scmp.lt.s32.totalorder %s903_s15, 3 }
   0x4   : > { %p166_p2 = pnand %p713_p0, %p165_p1 }
   0x5   : > { %v877_v0 = vld [vmem:[%s1059_s1 + $0x14] sm:$0xff] (!%p166_p2)   ;;  %v905_v1 = vmov (!%p166_p2), 0.0   ;;  %vm257_vm0 = vcmask (!%p166_p2), 1043456   ;;  %v879_v3 = vld [vmem:[%s1059_s1 + $0x1c] sm:$0xff] (!%p166_p2)   ;;  %p194_p3 = scmp.lt.s32.totalorder (!%p166_p2), %s709_s16, 1  ;;  %vm906_vm1 = vmmov (!%p166_p2), 0  }
   0x6   : > { %169 = sbr.rel (%p166_p2) target bundleno = 264 (0x108), region = 32  ;;  %791 = vmatprep.subr.bf16.mxu0 (!%p166_p2), %v905_v1  ;;  %811 = vmatprep.subr.bf16.mxu1 (!%p166_p2), %v905_v1  ;;  %v878_v2 = vld [vmem:[%s1060_s2 + $0x14] sm:$0xff] (!%p166_p2)   ;;  %v880_v4 = vld [vmem:[%s1060_s2 + $0x1c] sm:$0xff] (!%p166_p2)   ;;  %v881_v5 = vld [vmem:[%s1059_s1 + $0x24] ss:$0 sps:$4 sm:$0xff] (!%p166_p2)   ;;  %vm253_vm2 = vcmask (!%p166_p2), 326656  }
   0x7   : > { %792 = vmatpush3.bf16.msra.mxu0 (!%p166_p2), %v877_v0  ;;  %812 = vmatpush3.bf16.msra.mxu1 (!%p166_p2), %v878_v2  ;;  %v882_v6 = vld [vmem:[%s1060_s2 + $0x24] ss:$0 sps:$4 sm:$0xff] (!%p166_p2)   ;;  %v259_v7 = vsel (!%p166_p2), %vm257_vm0, %v881_v5, 0  ;;  %v886_v18 = vld [vmem:[%s1059_s1 + $0x8] sm:$0xff] (!%p166_p2)   ;;  %v888_v20 = vld [vmem:[%s1059_s1 + $0x10] ss:$0 sps:$4 sm:$0xff] (!%p166_p2)  }
   0x8   : > { %793 = vmatprep.subr.bf16.mxu0 (!%p166_p2), %v905_v1  ;;  %813 = vmatprep.subr.bf16.mxu1 (!%p166_p2), %v905_v1  ;;  %v384_v8 = vsel (!%p166_p2), %vm257_vm0, %v882_v6, 0  ;;  %v884_v15 = vld [vmem:[%s1059_s1] sm:$0xff] (!%p166_p2)   ;;  %v887_v19 = vld [vmem:[%s1060_s2 + $0x8] sm:$0xff] (!%p166_p2)   ;;  %v889_v21 = vld [vmem:[%s1060_s2 + $0x10] ss:$0 sps:$4 sm:$0xff] (!%p166_p2)   ;;  %v320_v22 = vsel (!%p166_p2), %vm257_vm0, %v888_v20, 0 }
   0x9   : > { %797 = vmatprep.mubr.msk.bf16.mxu0 (!%p166_p2), %vm906_vm1, %v905_v1  ;;  %817 = vmatprep.mubr.msk.bf16.mxu1 (!%p166_p2), %vm906_vm1, %v905_v1  ;;  %v885_v16 = vld [vmem:[%s1060_s2] sm:$0xff] (!%p166_p2)   ;;  %v442_v23 = vsel (!%p166_p2), %vm257_vm0, %v889_v21, 0  ;;  %v890_v24 = vld [vmem:[%s1059_s1 + $0x28] sm:$0xff] (!%p166_p2)   ;;  %v892_v26 = vld [vmem:[%s1059_s1 + $0x30] sm:$0xff] (!%p166_p2)   ;;  %vm622_vm3 = vcmask (!%p166_p2), 261120  }
   0xa   : > { %v891_v25 = vld [vmem:[%s1060_s2 + $0x28] sm:$0xff] (!%p166_p2)   ;;  %v893_v27 = vld [vmem:[%s1060_s2 + $0x30] sm:$0xff] (!%p166_p2)   ;;  %v894_v29 = vld [vmem:[%s1059_s1 + $0x38] ss:$0 sps:$4 sm:$0xff] (!%p166_p2)  }
   0xb   : > { %794 = vmatpush3.bf16.msra.mxu0 (!%p166_p2), %v879_v3  ;;  %814 = vmatpush3.bf16.msra.mxu1 (!%p166_p2), %v880_v4  ;;  %v895_v30 = vld [vmem:[%s1060_s2 + $0x38] ss:$0 sps:$4 sm:$0xff] (!%p166_p2)   ;;  %v514_v32 = vsel (!%p166_p2), %vm257_vm0, %v894_v29, 0 }
   0xc   : > { %795 = vmatprep.subr.bf16.mxu0 (!%p166_p2), %v905_v1  ;;  %815 = vmatprep.subr.bf16.mxu1 (!%p166_p2), %v905_v1  ;;  %v579_v33 = vsel (!%p166_p2), %vm257_vm0, %v895_v30, 0 }
   0xd   : > { %s1064_s16 = smov (!%p194_p3, %s709_s16), 1 }
   0xe   : > { %s969_s29 = sshll.u32 %s1064_s16, 3 }
   0xf   : > { %s976_s6 = scalar_lea.vmem %s1058_s0, %s969_s29  ;;  %796 = vmatpush3.bf16.msra.mxu0 %v259_v7  ;;  %816 = vmatpush3.bf16.msra.mxu1 %v384_v8  ;;  %s202_s9 = scalar_lea.vmem %s1061_s3, %s969_s29 }
  0x10   : > { %v208_v9 = vld [vmem:[%s976_s6] sm:$0xf]  ;;  %v219_v10 = vld [vmem:[%s976_s6 + $0x4] sm:$0x1]  ;;  %801 = vmatprep.subr.bf16.mxu0 %v905_v1  ;;  %821 = vmatprep.subr.bf16.mxu1 %v905_v1  ;;  %s206_s12 = scalar_lea.vmem %s1062_s4, %s969_s29 }
  0x11   : > { %v723_v11 = vcombine.low %v208_v9, %v219_v10  ;;  %v484_v28 = vld [vmem:[%s976_s6] sm:$0xe] }
  0x12   : > { %v750_v31 = vcombine.low %v484_v28, %v219_v10 }
  0x13   : > { %v232_v12 = vshrl.u32 %v723_v11, 16  ;;  %v234_v13 = vshll.u32 %v723_v11, 16 }
  0x14   : > { %v494_v34 = vrot.slane %v750_v31, 1 }
  0x15   : > { %v236_v14 = vrot.slane %v234_v13, 1 }
  0x17   : > { %v237_v17 = vor.u32 %v236_v14, %v232_v12 }
  0x19   : > { %798 = vmatmul.mubr.msk.bf16.vlgmr.msra.gmra.mrb[0].mxu0 %vm253_vm2, %v237_v17  ;;  %818 = vmatmul.mubr.msk.bf16.vlgmr.msra.gmra.mrb[0].mxu1 %vm253_vm2, %v237_v17 }
  0x1a   : > { %802 = vmatpush3.bf16.msra.mxu0 %v884_v15  ;;  %822 = vmatpush3.bf16.msra.mxu1 %v885_v16 }
  0x1b   : > { %803 = vmatprep.subr.bf16.mxu0 %v905_v1  ;;  %823 = vmatprep.subr.bf16.mxu1 %v905_v1 }
  0x1c   : > { %807 = vmatprep.mubr.msk.bf16.mxu0 %vm906_vm1, %v905_v1  ;;  %827 = vmatprep.mubr.msk.bf16.mxu1 %vm906_vm1, %v905_v1 }
  0x1e   : > { %804 = vmatpush3.bf16.msra.mxu0 %v886_v18  ;;  %824 = vmatpush3.bf16.msra.mxu1 %v887_v19 }
  0x1f   : > { %805 = vmatprep.subr.bf16.mxu0 %v905_v1  ;;  %825 = vmatprep.subr.bf16.mxu1 %v905_v1 }
  0x22   : > { %806 = vmatpush3.bf16.msra.mxu0 %v320_v22  ;;  %826 = vmatpush3.bf16.msra.mxu1 %v442_v23 }
  0x23   : > { %831 = vmatprep.subr.bf16.mxu0 %v905_v1  ;;  %841 = vmatprep.subr.bf16.mxu1 %v905_v1 }
  0x25   : > { %808 = vmatmul.mubr.msk.bf16.vlgmr.msra.gmra.mrb[0].mxu0 %vm253_vm2, %v208_v9  ;;  %828 = vmatmul.mubr.msk.bf16.vlgmr.msra.gmra.mrb[0].mxu1 %vm253_vm2, %v208_v9 }
  0x26   : > { %832 = vmatpush3.bf16.msra.mxu0 %v890_v24  ;;  %842 = vmatpush3.bf16.msra.mxu1 %v891_v25 }
  0x27   : > { %833 = vmatprep.subr.bf16.mxu0 %v905_v1  ;;  %843 = vmatprep.subr.bf16.mxu1 %v905_v1 }
  0x28   : > { %837 = vmatprep.mubr.msk.bf16.mxu0 %vm906_vm1, %v905_v1  ;;  %847 = vmatprep.mubr.msk.bf16.mxu1 %vm906_vm1, %v905_v1 }
  0x2a   : > { %834 = vmatpush3.bf16.msra.mxu0 %v892_v26  ;;  %844 = vmatpush3.bf16.msra.mxu1 %v893_v27 }
  0x2b   : > { %835 = vmatprep.subr.bf16.mxu0 %v905_v1  ;;  %845 = vmatprep.subr.bf16.mxu1 %v905_v1 }
  0x2e   : > { %836 = vmatpush3.bf16.msra.mxu0 %v514_v32  ;;  %846 = vmatpush3.bf16.msra.mxu1 %v579_v33 }
  0x31   : > { %838 = vmatmul.mubr.msk.bf16.vlgmr.msra.gmra.mrb[0].mxu0 %vm253_vm2, %v494_v34  ;;  %848 = vmatmul.mubr.msk.bf16.vlgmr.msra.gmra.mrb[0].mxu1 %vm253_vm2, %v494_v34 }
 0x104   : > { %v550_v35 = vpop.f32.mrb[0].mxu0  ;;  %v615_v36 = vpop.f32.mrb[0].mxu1 }
 0x105   : > { %623 = vst.msk [vmem:[%s202_s9] sm:$0xff] %vm622_vm3, %v550_v35  ;;  %624 = vst.msk [vmem:[%s206_s12] sm:$0xff] %vm622_vm3, %v615_v36  ;;  %v839_v37 = vpop.f32.mrb[1].mxu0  ;;  %v849_v38 = vpop.f32.mrb[1].mxu1 }
 0x106   : > { %v553_v39 = vpop.f32.mrb[2].mxu0  ;;  %v618_v40 = vpop.f32.mrb[2].mxu1 }
 0x107   : > { %v840_v41 = vpop.f32.mrb[3].mxu0  ;;  %v850_v42 = vpop.f32.mrb[3].mxu1 }
 0x108 PF: > { %s15_s15 = sadd.s32 1, %s903_s15  }
 0x109   : > { %p12_p4 = scmp.ge.s32.totalorder %s15_s15, 4  }
 0x10b   :  { %14 = sbr.rel (!%p12_p4) target bundleno = 1 (0x1), region = 78 }

// kernel: squeeze.4
= control target key start
LH: loop header
LB: loop body
LE: loop exit
PB: predicated region body
PF: predicated region fallthrough
CT: control target
= control target key end

     0   :  { %s130_s8 = smov 116   ;;  %s131_s9 = smov 120   ;;  %vm7_vm0 = vcmask 31744   ;;  %s221_s0 = inlined_call_operand.vmem [shape: f32[64], index: 0, kind: input, shape index: {}]   ;;  %s222_s1 = inlined_call_operand.vmem [shape: f32[16,4], index: 1, kind: output, shape index: {}]  }
   0x1   :  { %v4_v0 = vld [vmem:[%s221_s0] sm:$0x1]  ;;  %s129_s0 = smov 124   ;;  %s132_s10 = smov 112  }
   0x2   :  { %5 = vst [vmem:[#allocation0] sm:$0x1] %v4_v0  ;;  %s133_s11 = smov 108   ;;  %s134_s12 = smov 104  }
   0x3   :  { %s135_s13 = smov 100   ;;  %s136_s14 = smov 96  }
   0x4   :  { %s137_s17 = smov 92   ;;  %s138_s18 = smov 88  }
   0x5   :  { %s139_s19 = smov 84   ;;  %s140_s20 = smov 80  }
   0x6   :  { %s141_s21 = smov 76   ;;  %s142_s22 = smov 72  }
   0x7   :  { %s143_s23 = smov 68  }
   0x9   :  { %v9_v1 = vld [vmem:[#allocation0] sm:$0x1]  }
   0xa   :  { %v21_v2 = vld [vmem:[#allocation0] sm:$0x1]   ;;  %10 = vrot.lane.b32.xlu0 %v9_v1, %s129_s0 }
   0xb   :  { %22 = vrot.lane.b32.xlu1 %v21_v2, %s130_s8  ;;  %v15_v3 = vld [vmem:[#allocation0] sm:$0x1]  }
   0xc   :  { %v27_v4 = vld [vmem:[#allocation0] sm:$0x1]  }
   0xd   :  { %v33_v5 = vld [vmem:[#allocation0] sm:$0x1]  }
   0xe   :  { %16 = vrot.lane.b32.xlu0 %v15_v3, %s131_s9  ;;  %v39_v6 = vld [vmem:[#allocation0] sm:$0x1]  }
   0xf   :  { %28 = vrot.lane.b32.xlu1 %v27_v4, %s132_s10  ;;  %v45_v7 = vld [vmem:[#allocation0] sm:$0x1]  }
  0x10   :  { %v51_v8 = vld [vmem:[#allocation0] sm:$0x1]  }
  0x11   :  { %v57_v9 = vld [vmem:[#allocation0] sm:$0x1]  }
  0x12   :  { %34 = vrot.lane.b32.xlu0 %v33_v5, %s133_s11  ;;  %v63_v10 = vld [vmem:[#allocation0] sm:$0x1]  }
  0x13   :  { %40 = vrot.lane.b32.xlu1 %v39_v6, %s134_s12  ;;  %v6_v11 = vld [vmem:[#allocation0] sm:$0x1]  }
  0x14   :  { %8 = vst.msk [vmem:[%s222_s1] sm:$0x1] %vm7_vm0, %v6_v11   ;;  %v69_v12 = vld [vmem:[#allocation0] sm:$0x1]  }
  0x15   :  { %v75_v13 = vld [vmem:[#allocation0] sm:$0x1]  }
  0x16   :  { %46 = vrot.lane.b32.xlu0 %v45_v7, %s135_s13  ;;  %v81_v14 = vld [vmem:[#allocation0] sm:$0x1]  }
  0x17   :  { %52 = vrot.lane.b32.xlu1 %v51_v8, %s136_s14  ;;  %v87_v15 = vld [vmem:[#allocation0] sm:$0x1]  }
  0x18   :  { %v93_v16 = vld [vmem:[#allocation0] sm:$0x1]  }
  0x1a   :  { %58 = vrot.lane.b32.xlu0 %v57_v9, %s137_s17 }
  0x1b   :  { %64 = vrot.lane.b32.xlu1 %v63_v10, %s138_s18 }
  0x1e   :  { %70 = vrot.lane.b32.xlu0 %v69_v12, %s139_s19 }
  0x1f   :  { %76 = vrot.lane.b32.xlu1 %v75_v13, %s140_s20 }
  0x22   :  { %82 = vrot.lane.b32.xlu0 %v81_v14, %s141_s21 }
  0x23   :  { %88 = vrot.lane.b32.xlu1 %v87_v15, %s142_s22 }
  0x26   :  { %94 = vrot.lane.b32.xlu0 %v93_v16, %s143_s23 }
  0x7c   :  { %v11_v17 = vpop.permute.xlu0 %10  }
  0x7d   :  { %v23_v18 = vpop.permute.xlu1 %22   ;;  %99 = vst.msk [vmem:[%s222_s1 + $0x1] sm:$0x1] %vm7_vm0, %v11_v17  }
  0x7e   :  { %101 = vst.msk [vmem:[%s222_s1 + $0x3] sm:$0x1] %vm7_vm0, %v23_v18  }
  0x80   :  { %v17_v19 = vpop.permute.xlu0 %16  }
  0x81   :  { %v29_v20 = vpop.permute.xlu1 %28   ;;  %100 = vst.msk [vmem:[%s222_s1 + $0x2] sm:$0x1] %vm7_vm0, %v17_v19  }
  0x82   :  { %102 = vst.msk [vmem:[%s222_s1 + $0x4] sm:$0x1] %vm7_vm0, %v29_v20  }
  0x84   :  { %v35_v21 = vpop.permute.xlu0 %34  }
  0x85   :  { %v41_v22 = vpop.permute.xlu1 %40   ;;  %103 = vst.msk [vmem:[%s222_s1 + $0x5] sm:$0x1] %vm7_vm0, %v35_v21  }
  0x86   :  { %104 = vst.msk [vmem:[%s222_s1 + $0x6] sm:$0x1] %vm7_vm0, %v41_v22  }
  0x88   :  { %v47_v23 = vpop.permute.xlu0 %46  }
  0x89   :  { %v53_v24 = vpop.permute.xlu1 %52   ;;  %105 = vst.msk [vmem:[%s222_s1 + $0x7] sm:$0x1] %vm7_vm0, %v47_v23  }
  0x8a   :  { %106 = vst.msk [vmem:[%s222_s1 + $0x8] sm:$0x1] %vm7_vm0, %v53_v24  }
  0x8c   :  { %v59_v25 = vpop.permute.xlu0 %58  }
  0x8d   :  { %v65_v26 = vpop.permute.xlu1 %64   ;;  %107 = vst.msk [vmem:[%s222_s1 + $0x9] sm:$0x1] %vm7_vm0, %v59_v25  }
  0x8e   :  { %108 = vst.msk [vmem:[%s222_s1 + $0xa] sm:$0x1] %vm7_vm0, %v65_v26  }
  0x90   :  { %v71_v27 = vpop.permute.xlu0 %70  }
  0x91   :  { %v77_v28 = vpop.permute.xlu1 %76   ;;  %109 = vst.msk [vmem:[%s222_s1 + $0xb] sm:$0x1] %vm7_vm0, %v71_v27  }
  0x92   :  { %110 = vst.msk [vmem:[%s222_s1 + $0xc] sm:$0x1] %vm7_vm0, %v77_v28  }
  0x94   :  { %v83_v29 = vpop.permute.xlu0 %82  }
  0x95   :  { %v89_v30 = vpop.permute.xlu1 %88   ;;  %111 = vst.msk [vmem:[%s222_s1 + $0xd] sm:$0x1] %vm7_vm0, %v83_v29  }
  0x96   :  { %112 = vst.msk [vmem:[%s222_s1 + $0xe] sm:$0x1] %vm7_vm0, %v89_v30  }
  0x98   :  { %v95_v31 = vpop.permute.xlu0 %94  }
  0x99   :  { %113 = vst.msk [vmem:[%s222_s1 + $0xf] sm:$0x1] %vm7_vm0, %v95_v31  }

// kernel: conv_bn_forward.8
= control target key start
LH: loop header
LB: loop body
LE: loop exit
PB: predicated region body
PF: predicated region fallthrough
CT: control target
= control target key end

     0   :  { %s658_s15 = smov 0   ;;  %s660_s16 = smov 0   ;;  %s719_s0 = inlined_call_operand.vmem [shape: f32[2,16,64], index: 0, kind: input, shape index: {}]   ;;  %s720_s1 = inlined_call_operand.vmem [shape: f32[2,8,32], index: 1, kind: input, shape index: {}]   ;;  %s721_s2 = inlined_call_operand.vmem [shape: f32[16,8], index: 2, kind: input, shape index: {}]   ;;  %s722_s3 = inlined_call_operand.vmem [shape: f32[32,64], index: 3, kind: input, shape index: {}]   ;;  %s723_s4 = inlined_call_operand.vmem [shape: f32[2,2,64], index: 4, kind: output, shape index: {}]  }
   0x1   :  { %s662_s17 = smov 0  }
   0x2 LB: > { %s26_s18 = sadd.s32 1, %s624_s16  ;;  %p538_p0 = scmp.ge.s32.totalorder %s628_s17, 1  ;;  %s628_s17 = sphi %s662_s17, %s14_s17   ;;  %s624_s16 = sphi %s660_s16, %s725_s16   ;;  %s620_s15 = sphi %s658_s15, %s724_s15  }
   0x3   : > { %p28_p1 = scmp.ge.s32.totalorder %s26_s18, 2  ;;  %p195_p2 = scmp.lt.s32.totalorder %s628_s17, 3 }
   0x5   : > { %s727_s18 = smov (%p28_p1, %s26_s18), 0  ;;  %p196_p3 = pnand %p538_p0, %p195_p2 }
   0x6   : > { %v255_v0 = vld [vmem:[%s722_s3] sm:$0xff] (!%p196_p3)  ;;  %v256_v1 = vld [vmem:[%s722_s3 + $0x8] sm:$0xff] (!%p196_p3)  ;;  %v257_v2 = vld [vmem:[%s722_s3 + $0x10] sm:$0xff] (!%p196_p3)  ;;  %p232_p4 = scmp.lt.s32.totalorder (!%p196_p3), %s620_s15, 1  ;;  %v630_v3 = vmov (!%p196_p3), 0.0|0.0   ;;  %vm631_vm0 = vmmov (!%p196_p3), 0  }
   0x7   : > { %199 = sbr.rel (%p196_p3) target bundleno = 468 (0x1d4), region = 36  ;;  %573 = vmatprep.subr.bf16.mxu0 (!%p196_p3), %v630_v3  ;;  %v574_v4 = vpack.c.bf16 (!%p196_p3), %v256_v1, %v255_v0  ;;  %v258_v5 = vld [vmem:[%s722_s3 + $0x18] sm:$0xff] (!%p196_p3)  ;;  %v632_v6 = vmov (!%p196_p3), 0.0   ;;  %vm446_vm1 = vcmask (!%p196_p3), 517120   ;;  %vm259_vm2 = vcmask (!%p196_p3), 261120   ;;  %v252_v9 = vld [vmem:[%s721_s2] sm:$0xff] (!%p196_p3) }
   0x8   : > { %565 = vmatprep.mubr.msk.f32.mxu0 (!%p196_p3), %vm631_vm0, %v632_v6  ;;  %v577_v7 = vpack.c.bf16 (!%p196_p3), %v258_v5, %v257_v2  ;;  %vm333_vm3 = vcmask (!%p196_p3), 64512   ;;  %v253_v11 = vld [vmem:[%s721_s2 + $0x8] sm:$0xff] (!%p196_p3)  ;;  %vm419_vm4 = vcmask (!%p196_p3), 523264   ;;  %vm440_vm5 = vcmask (!%p196_p3), 1040384  }
   0x9   : > { %575 = vmatpush3.bf16.msra.mxu0 (!%p196_p3), %v574_v4  ;;  %570 = vmatprep.mubr.msk.f32.mxu1 (!%p196_p3), %vm333_vm3, %v252_v9 }
   0xa   : > { %576 = vmatprep.subr.bf16.mxu0 (!%p196_p3), %v630_v3 }
   0xd   : > { %578 = vmatpush3.bf16.msra.mxu0 (!%p196_p3), %v577_v7 }
   0xe   : > { %s729_s15 = smov (!%p232_p4, %s620_s15), 1 }
   0xf   : > { %s542_s27 = sshll.u32 %s729_s15, 1  ;;  %s541_s28 = sshll.u32 %s729_s15, 3 }
  0x10   : > { %s691_s5 = scalar_lea.vmem %s723_s4, %s542_s27  ;;  %s247_s8 = scalar_lea.vmem %s720_s1, %s541_s28 }
  0x11   : > { %447 = vst.msk [vmem:[%s691_s5] sm:$0x3] %vm446_vm1, %v632_v6  ;;  %v254_v8 = vld [vmem:[%s247_s8] sm:$0xff]  ;;  %s548_s13 = sshll.u32 %s729_s15, 4 }
  0x12   : > { %566 = vmatmul.mubr.msk.f32.vlgmr.msra.gmra.mrb[0].mxu0 %vm259_vm2, %v254_v8  ;;  %s239_s20 = scalar_lea.vmem %s719_s0, %s548_s13 }
  0x13   : > { %v416_v13 = vld [vmem:[%s239_s20 + $0x8] sm:$0xff]  ;;  %v415_v14 = vld [vmem:[%s239_s20] sm:$0xff] }
  0x18   : > { %v448_v37 = vld [vmem:[%s691_s5] sm:$0x3] }
  0xe5   : > { %v329_v10 = vpop.f32.mrb[0].mxu0 }
  0xe6   : > { %v567_v12 = vpop.f32.mrb[1].mxu0  ;;  %568 = vmatprep.subr.mxu1 %v329_v10 }
  0xe7   : > { %569 = vmatpush3.msra.mxu1 %v329_v10 }
  0xe8   : > { %571 = vmatmul.mubr.msk.f32.vlgmr.msra.gmra.mrb[0].mxu1 %vm333_vm3, %v253_v11 }
 0x1bb   : > { %v572_v15 = vpop.f32.mrb[0].mxu1 }
 0x1bc   : > { %v418_v16 = vadd.f32 %v572_v15, %v416_v13  ;;  %v406_v17 = vpop.f32.mrb[1].mxu1 }
 0x1bd   : > { %v417_v18 = vadd.f32 %v415_v14, %v406_v17 }
 0x1be   : > { %v421_v19 = vsel %vm419_vm4, %v418_v16, 0.0  ;;  %v430_v20 = vmul.f32 %v418_v16, %v418_v16 }
 0x1bf   : > { %v420_v21 = vsel %vm419_vm4, %v417_v18, 0.0  ;;  %v429_v22 = vmul.f32 %v417_v18, %v417_v18 }
 0x1c0   : > { %v432_v23 = vsel %vm419_vm4, %v430_v20, 0.0  ;;  %v422_v24 = vadd.f32 %v421_v19, %v420_v21 }
 0x1c1   : > { %v431_v25 = vsel %vm419_vm4, %v429_v22, 0.0 }
 0x1c2   : > { %v423_v26 = vrot.slane %v422_v24, 4  ;;  %v433_v27 = vadd.f32 %v432_v23, %v431_v25 }
 0x1c4   : > { %v424_v28 = vadd.f32 %v423_v26, %v422_v24  ;;  %v434_v29 = vrot.slane %v433_v27, 4 }
 0x1c6   : > { %v425_v30 = vrot.slane %v424_v28, 2  ;;  %v435_v31 = vadd.f32 %v434_v29, %v433_v27 }
 0x1c8   : > { %v426_v32 = vadd.f32 %v425_v30, %v424_v28  ;;  %v436_v33 = vrot.slane %v435_v31, 2 }
 0x1ca   : > { %v427_v34 = vrot.slane %v426_v32, 1  ;;  %v437_v35 = vadd.f32 %v436_v33, %v435_v31 }
 0x1cc   : > { %v438_v36 = vrot.slane %v437_v35, 1  ;;  %v428_v38 = vadd.f32 %v427_v34, %v426_v32 }
 0x1ce   : > { %v439_v39 = vadd.f32 %v438_v36, %v437_v35 }
 0x1d0   : > { %v441_v40 = vsel %vm440_vm5, %v428_v38, %v439_v39 }
 0x1d1   : > { %v449_v41 = vadd.f32 %v448_v37, %v441_v40 }
 0x1d3   : > { %451 = vst.msk [vmem:[%s691_s5] sm:$0x3] %vm446_vm1, %v449_v41 }
 0x1d4 PF: > { %s14_s17 = sadd.s32 1, %s628_s17   ;;  %s724_s15 = smov %s624_s16 }
 0x1d5   : > { %p11_p5 = scmp.ge.s32.totalorder %s14_s17, 4   ;;  %s725_s16 = smov %s727_s18 }
 0x1d7   :  { %13 = sbr.rel (!%p11_p5) target bundleno = 2 (0x2), region = 73 }

// kernel: tile.23
= control target key start
LH: loop header
LB: loop body
LE: loop exit
PB: predicated region body
PF: predicated region fallthrough
CT: control target
= control target key end

     0   :  { %s28_s0 = inlined_call_operand.vmem [shape: f32[4], index: 0, kind: input, shape index: {}]   ;;  %s29_s1 = inlined_call_operand.vmem [shape: f32[16,4], index: 1, kind: output, shape index: {}]  }
   0x1   :  { %v4_v0 = vld [vmem:[%s28_s0] ss:$0 sm:$0xff] }
   0x2   :  { %5 = vst [vmem:[%s29_s1] sm:$0xff] %v4_v0  ;;  %8 = vst [vmem:[%s29_s1 + $0x8] sm:$0xff] %v4_v0 }

// kernel: tile.24
= control target key start
LH: loop header
LB: loop body
LE: loop exit
PB: predicated region body
PF: predicated region fallthrough
CT: control target
= control target key end

     0   :  { %s131_s10 = smov 60   ;;  %s132_s11 = smov 52   ;;  %vm3_vm0 = vcmask 31744   ;;  %vm9_vm1 = vcmask 523744   ;;  %vm15_vm2 = vcmask 490944   ;;  %vm21_vm3 = vcmask 458144   ;;  %s207_s0 = inlined_call_operand.vmem [shape: f32[16,4], index: 0, kind: input, shape index: {}]   ;;  %s208_s1 = inlined_call_operand.vmem [shape: f32[1,64], index: 1, kind: output, shape index: {}]  }
   0x1   :  { %v101_v0 = vld [vmem:[%s207_s0 + $0xf] sm:$0x1]   ;;  %v103_v1 = vld [vmem:[%s207_s0 + $0xd] sm:$0x1]   ;;  %v102_v2 = vld [vmem:[%s207_s0 + $0xe] sm:$0x1]  }
   0x2   :  { %7 = vrot.lane.b32.xlu0 %v101_v0, %s131_s10  ;;  %19 = vrot.lane.b32.xlu1 %v103_v1, %s132_s11  ;;  %v104_v3 = vld [vmem:[%s207_s0 + $0xc] sm:$0x1]   ;;  %s133_s16 = smov 56   ;;  %s134_s17 = smov 48   ;;  %v105_v4 = vld [vmem:[%s207_s0 + $0xb] sm:$0x1]  }
   0x3   :  { %v106_v5 = vld [vmem:[%s207_s0 + $0xa] sm:$0x1]   ;;  %v2_v6 = vld [vmem:[%s207_s0] sm:$0x1]   ;;  %s135_s24 = smov 44   ;;  %s136_s25 = smov 40  }
   0x4   :  { %4 = vst.msk [vmem:[#allocation0] sm:$0x1] %vm3_vm0, %v2_v6   ;;  %v107_v7 = vld [vmem:[%s207_s0 + $0x9] sm:$0x1]   ;;  %v108_v8 = vld [vmem:[%s207_s0 + $0x8] sm:$0x1]  }
   0x5   :  { %s137_s30 = smov 36   ;;  %s138_s2 = smov 32   ;;  %v109_v9 = vld [vmem:[%s207_s0 + $0x7] sm:$0x1]   ;;  %v110_v10 = vld [vmem:[%s207_s0 + $0x6] sm:$0x1]  }
   0x6   :  { %13 = vrot.lane.b32.xlu0 %v102_v2, %s133_s16  ;;  %25 = vrot.lane.b32.xlu1 %v104_v3, %s134_s17  ;;  %s139_s7 = smov 28   ;;  %s140_s8 = smov 24   ;;  %v111_v11 = vld [vmem:[%s207_s0 + $0x5] sm:$0x1]   ;;  %v112_v12 = vld [vmem:[%s207_s0 + $0x4] sm:$0x1]  }
   0x7   :  { %s141_s13 = smov 20   ;;  %s142_s14 = smov 16   ;;  %v113_v13 = vld [vmem:[%s207_s0 + $0x3] sm:$0x1]   ;;  %v114_v14 = vld [vmem:[%s207_s0 + $0x2] sm:$0x1]  }
   0x8   :  { %s143_s19 = smov 12   ;;  %s144_s20 = smov 8   ;;  %v115_v15 = vld [vmem:[%s207_s0 + $0x1] sm:$0x1]   ;;  %vm27_vm4 = vcmask 425344   ;;  %vm33_vm5 = vcmask 392544  }
   0x9   :  { %s145_s0 = smov 4   ;;  %vm39_vm6 = vcmask 359744   ;;  %vm45_vm7 = vcmask 326944   ;;  %vm51_vm8 = vcmask 294144   ;;  %vm57_vm9 = vcmask 261344  }
   0xa   :  { %31 = vrot.lane.b32.xlu0 %v105_v4, %s135_s24  ;;  %37 = vrot.lane.b32.xlu1 %v106_v5, %s136_s25  ;;  %vm63_vm10 = vcmask 228544   ;;  %vm69_vm11 = vcmask 195744   ;;  %vm75_vm12 = vcmask 162944   ;;  %vm81_vm13 = vcmask 130144  }
   0xb   :  { %vm87_vm14 = vcmask 97344   ;;  %vm93_vm15 = vcmask 64544  }
   0xe   :  { %43 = vrot.lane.b32.xlu0 %v107_v7, %s137_s30  ;;  %49 = vrot.lane.b32.xlu1 %v108_v8, %s138_s2 }
  0x12   :  { %55 = vrot.lane.b32.xlu0 %v109_v9, %s139_s7  ;;  %61 = vrot.lane.b32.xlu1 %v110_v10, %s140_s8 }
  0x16   :  { %67 = vrot.lane.b32.xlu0 %v111_v11, %s141_s13  ;;  %73 = vrot.lane.b32.xlu1 %v112_v12, %s142_s14 }
  0x1a   :  { %79 = vrot.lane.b32.xlu0 %v113_v13, %s143_s19  ;;  %85 = vrot.lane.b32.xlu1 %v114_v14, %s144_s20 }
  0x1e   :  { %91 = vrot.lane.b32.xlu0 %v115_v15, %s145_s0 }
  0x74   :  { %v8_v16 = vpop.permute.xlu0 %7   ;;  %v20_v17 = vpop.permute.xlu1 %19  }
  0x75   :  { %10 = vst.msk [vmem:[#allocation0] sm:$0x1] %vm9_vm1, %v8_v16  }
  0x78   :  { %v14_v18 = vpop.permute.xlu0 %13   ;;  %v26_v19 = vpop.permute.xlu1 %25  }
  0x79   :  { %16 = vst.msk [vmem:[#allocation0] sm:$0x1] %vm15_vm2, %v14_v18  }
  0x7a   :  { %22 = vst.msk [vmem:[#allocation0] sm:$0x1] %vm21_vm3, %v20_v17  }
  0x7b   :  { %28 = vst.msk [vmem:[#allocation0] sm:$0x1] %vm27_vm4, %v26_v19  }
  0x7c   :  { %v32_v20 = vpop.permute.xlu0 %31   ;;  %v38_v21 = vpop.permute.xlu1 %37  }
  0x7d   :  { %34 = vst.msk [vmem:[#allocation0] sm:$0x1] %vm33_vm5, %v32_v20  }
  0x7e   :  { %40 = vst.msk [vmem:[#allocation0] sm:$0x1] %vm39_vm6, %v38_v21  }
  0x80   :  { %v44_v22 = vpop.permute.xlu0 %43   ;;  %v50_v23 = vpop.permute.xlu1 %49  }
  0x81   :  { %46 = vst.msk [vmem:[#allocation0] sm:$0x1] %vm45_vm7, %v44_v22  }
  0x82   :  { %52 = vst.msk [vmem:[#allocation0] sm:$0x1] %vm51_vm8, %v50_v23  }
  0x84   :  { %v56_v24 = vpop.permute.xlu0 %55   ;;  %v62_v25 = vpop.permute.xlu1 %61  }
  0x85   :  { %58 = vst.msk [vmem:[#allocation0] sm:$0x1] %vm57_vm9, %v56_v24  }
  0x86   :  { %64 = vst.msk [vmem:[#allocation0] sm:$0x1] %vm63_vm10, %v62_v25  }
  0x88   :  { %v68_v26 = vpop.permute.xlu0 %67   ;;  %v74_v27 = vpop.permute.xlu1 %73  }
  0x89   :  { %70 = vst.msk [vmem:[#allocation0] sm:$0x1] %vm69_vm11, %v68_v26  }
  0x8a   :  { %76 = vst.msk [vmem:[#allocation0] sm:$0x1] %vm75_vm12, %v74_v27  }
  0x8c   :  { %v80_v28 = vpop.permute.xlu0 %79   ;;  %v86_v29 = vpop.permute.xlu1 %85  }
  0x8d   :  { %82 = vst.msk [vmem:[#allocation0] sm:$0x1] %vm81_vm13, %v80_v28  }
  0x8e   :  { %88 = vst.msk [vmem:[#allocation0] sm:$0x1] %vm87_vm14, %v86_v29  }
  0x90   :  { %v92_v30 = vpop.permute.xlu0 %91  }
  0x91   :  { %94 = vst.msk [vmem:[#allocation0] sm:$0x1] %vm93_vm15, %v92_v30  }
  0x98   :  { %v98_v31 = vld [vmem:[#allocation0] sm:$0x1] }
  0x99   :  { %100 = vst [vmem:[%s208_s1] sm:$0x1] %v98_v31 }

// kernel: squeeze.6
= control target key start
LH: loop header
LB: loop body
LE: loop exit
PB: predicated region body
PF: predicated region fallthrough
CT: control target
= control target key end

     0   :  { %s66_s8 = smov 116   ;;  %vm7_vm0 = vcmask 31744   ;;  %s67_s11 = smov 120   ;;  %s117_s0 = inlined_call_operand.vmem [shape: f32[32], index: 0, kind: input, shape index: {}]   ;;  %s118_s1 = inlined_call_operand.vmem [shape: f32[8,4], index: 1, kind: output, shape index: {}]  }
   0x1   :  { %v4_v0 = vld [vmem:[%s117_s0] sm:$0x1]  ;;  %s65_s0 = smov 124   ;;  %s68_s12 = smov 112  }
   0x2   :  { %5 = vst [vmem:[#allocation0] sm:$0x1] %v4_v0  ;;  %s69_s13 = smov 108   ;;  %s70_s14 = smov 104  }
   0x3   :  { %s71_s15 = smov 100  }
   0x9   :  { %v9_v1 = vld [vmem:[#allocation0] sm:$0x1]  }
   0xa   :  { %v21_v2 = vld [vmem:[#allocation0] sm:$0x1]   ;;  %10 = vrot.lane.b32.xlu0 %v9_v1, %s65_s0 }
   0xb   :  { %22 = vrot.lane.b32.xlu1 %v21_v2, %s66_s8  ;;  %v15_v3 = vld [vmem:[#allocation0] sm:$0x1]  }
   0xc   :  { %v27_v4 = vld [vmem:[#allocation0] sm:$0x1]  }
   0xd   :  { %v6_v5 = vld [vmem:[#allocation0] sm:$0x1]  }
   0xe   :  { %8 = vst.msk [vmem:[%s118_s1] sm:$0x1] %vm7_vm0, %v6_v5   ;;  %16 = vrot.lane.b32.xlu0 %v15_v3, %s67_s11  ;;  %v33_v6 = vld [vmem:[#allocation0] sm:$0x1]  }
   0xf   :  { %28 = vrot.lane.b32.xlu1 %v27_v4, %s68_s12  ;;  %v39_v7 = vld [vmem:[#allocation0] sm:$0x1]  }
  0x10   :  { %v45_v8 = vld [vmem:[#allocation0] sm:$0x1]  }
  0x12   :  { %34 = vrot.lane.b32.xlu0 %v33_v6, %s69_s13 }
  0x13   :  { %40 = vrot.lane.b32.xlu1 %v39_v7, %s70_s14 }
  0x16   :  { %46 = vrot.lane.b32.xlu0 %v45_v8, %s71_s15 }
  0x7c   :  { %v11_v9 = vpop.permute.xlu0 %10  }
  0x7d   :  { %v23_v10 = vpop.permute.xlu1 %22   ;;  %51 = vst.msk [vmem:[%s118_s1 + $0x1] sm:$0x1] %vm7_vm0, %v11_v9  }
  0x7e   :  { %53 = vst.msk [vmem:[%s118_s1 + $0x3] sm:$0x1] %vm7_vm0, %v23_v10  }
  0x80   :  { %v17_v11 = vpop.permute.xlu0 %16  }
  0x81   :  { %v29_v12 = vpop.permute.xlu1 %28   ;;  %52 = vst.msk [vmem:[%s118_s1 + $0x2] sm:$0x1] %vm7_vm0, %v17_v11  }
  0x82   :  { %54 = vst.msk [vmem:[%s118_s1 + $0x4] sm:$0x1] %vm7_vm0, %v29_v12  }
  0x84   :  { %v35_v13 = vpop.permute.xlu0 %34  }
  0x85   :  { %v41_v14 = vpop.permute.xlu1 %40   ;;  %55 = vst.msk [vmem:[%s118_s1 + $0x5] sm:$0x1] %vm7_vm0, %v35_v13  }
  0x86   :  { %56 = vst.msk [vmem:[%s118_s1 + $0x6] sm:$0x1] %vm7_vm0, %v41_v14  }
  0x88   :  { %v47_v15 = vpop.permute.xlu0 %46  }
  0x89   :  { %57 = vst.msk [vmem:[%s118_s1 + $0x7] sm:$0x1] %vm7_vm0, %v47_v15  }

// kernel: tile.33
= control target key start
LH: loop header
LB: loop body
LE: loop exit
PB: predicated region body
PF: predicated region fallthrough
CT: control target
= control target key end

     0   :  { %s22_s0 = inlined_call_operand.vmem [shape: f32[4], index: 0, kind: input, shape index: {}]   ;;  %s23_s1 = inlined_call_operand.vmem [shape: f32[8,4], index: 1, kind: output, shape index: {}]  }
   0x1   :  { %v4_v0 = vld [vmem:[%s22_s0] ss:$0 sm:$0xff] }
   0x2   :  { %5 = vst [vmem:[%s23_s1] sm:$0xff] %v4_v0 }

// kernel: tile.34
= control target key start
LH: loop header
LB: loop body
LE: loop exit
PB: predicated region body
PF: predicated region fallthrough
CT: control target
= control target key end

     0   :  { %s67_s10 = smov 28   ;;  %s68_s11 = smov 20   ;;  %vm3_vm0 = vcmask 31744   ;;  %vm9_vm1 = vcmask 261344   ;;  %vm15_vm2 = vcmask 228544   ;;  %vm21_vm3 = vcmask 195744   ;;  %s111_s0 = inlined_call_operand.vmem [shape: f32[8,4], index: 0, kind: input, shape index: {}]   ;;  %s112_s1 = inlined_call_operand.vmem [shape: f32[1,32], index: 1, kind: output, shape index: {}]  }
   0x1   :  { %v53_v0 = vld [vmem:[%s111_s0 + $0x7] sm:$0x1]   ;;  %v55_v1 = vld [vmem:[%s111_s0 + $0x5] sm:$0x1]   ;;  %v54_v2 = vld [vmem:[%s111_s0 + $0x6] sm:$0x1]  }
   0x2   :  { %7 = vrot.lane.b32.xlu0 %v53_v0, %s67_s10  ;;  %19 = vrot.lane.b32.xlu1 %v55_v1, %s68_s11  ;;  %v56_v3 = vld [vmem:[%s111_s0 + $0x4] sm:$0x1]   ;;  %v2_v4 = vld [vmem:[%s111_s0] sm:$0x1]   ;;  %s69_s18 = smov 24   ;;  %s70_s19 = smov 16  }
   0x3   :  { %4 = vst.msk [vmem:[#allocation0] sm:$0x1] %vm3_vm0, %v2_v4   ;;  %v57_v5 = vld [vmem:[%s111_s0 + $0x3] sm:$0x1]   ;;  %v58_v6 = vld [vmem:[%s111_s0 + $0x2] sm:$0x1]  }
   0x4   :  { %s71_s24 = smov 12   ;;  %s72_s25 = smov 8   ;;  %v59_v7 = vld [vmem:[%s111_s0 + $0x1] sm:$0x1]   ;;  %vm27_vm4 = vcmask 162944   ;;  %vm33_vm5 = vcmask 130144  }
   0x5   :  { %s73_s0 = smov 4   ;;  %vm39_vm6 = vcmask 97344   ;;  %vm45_vm7 = vcmask 64544  }
   0x6   :  { %13 = vrot.lane.b32.xlu0 %v54_v2, %s69_s18  ;;  %25 = vrot.lane.b32.xlu1 %v56_v3, %s70_s19 }
   0xa   :  { %31 = vrot.lane.b32.xlu0 %v57_v5, %s71_s24  ;;  %37 = vrot.lane.b32.xlu1 %v58_v6, %s72_s25 }
   0xe   :  { %43 = vrot.lane.b32.xlu0 %v59_v7, %s73_s0 }
  0x74   :  { %v8_v8 = vpop.permute.xlu0 %7   ;;  %v20_v9 = vpop.permute.xlu1 %19  }
  0x75   :  { %10 = vst.msk [vmem:[#allocation0] sm:$0x1] %vm9_vm1, %v8_v8  }
  0x78   :  { %v14_v10 = vpop.permute.xlu0 %13   ;;  %v26_v11 = vpop.permute.xlu1 %25  }
  0x79   :  { %16 = vst.msk [vmem:[#allocation0] sm:$0x1] %vm15_vm2, %v14_v10  }
  0x7a   :  { %22 = vst.msk [vmem:[#allocation0] sm:$0x1] %vm21_vm3, %v20_v9  }
  0x7b   :  { %28 = vst.msk [vmem:[#allocation0] sm:$0x1] %vm27_vm4, %v26_v11  }
  0x7c   :  { %v32_v12 = vpop.permute.xlu0 %31   ;;  %v38_v13 = vpop.permute.xlu1 %37  }
  0x7d   :  { %34 = vst.msk [vmem:[#allocation0] sm:$0x1] %vm33_vm5, %v32_v12  }
  0x7e   :  { %40 = vst.msk [vmem:[#allocation0] sm:$0x1] %vm39_vm6, %v38_v13  }
  0x80   :  { %v44_v14 = vpop.permute.xlu0 %43  }
  0x81   :  { %46 = vst.msk [vmem:[#allocation0] sm:$0x1] %vm45_vm7, %v44_v14  }
  0x88   :  { %v50_v15 = vld [vmem:[#allocation0] sm:$0x1] }
  0x89   :  { %52 = vst [vmem:[%s112_s1] sm:$0x1] %v50_v15 }

// kernel: conv_bn_forward.10
= control target key start
LH: loop header
LB: loop body
LE: loop exit
PB: predicated region body
PF: predicated region fallthrough
CT: control target
= control target key end

     0   :  { %s297_s6 = smov 0   ;;  %s299_s7 = smov 0   ;;  %s332_s0 = inlined_call_operand.vmem [shape: f32[2,8,32], index: 0, kind: input, shape index: {}]   ;;  %s333_s1 = inlined_call_operand.vmem [shape: f32[2,2,32], index: 1, kind: output, shape index: {}]  }
   0x1   :  { %s301_s8 = smov 0  }
   0x2 LB: > { %s23_s9 = sadd.s32 1, %s280_s7  ;;  %p232_p0 = scmp.ge.s32.totalorder %s284_s8, 1  ;;  %s284_s8 = sphi %s301_s8, %s11_s8   ;;  %s280_s7 = sphi %s299_s7, %s335_s7   ;;  %s276_s6 = sphi %s297_s6, %s334_s6  }
   0x3   : > { %p25_p1 = scmp.ge.s32.totalorder %s23_s9, 2  ;;  %p103_p2 = scmp.lt.s32.totalorder %s284_s8, 3 }
   0x5   : > { %s337_s9 = smov (%p25_p1, %s23_s9), 0  ;;  %p104_p3 = pnand %p232_p0, %p103_p2 }
   0x6   : > { %p124_p4 = scmp.lt.s32.totalorder (!%p104_p3), %s276_s6, 1  ;;  %vm158_vm0 = vcmask (!%p104_p3), 254976   ;;  %vm136_vm1 = vcmask (!%p104_p3), 261120   ;;  %v286_v1 = vmov (!%p104_p3), 0.0   ;;  %vm152_vm2 = vcmask (!%p104_p3), 1040384  }
   0x7   : > { %107 = sbr.rel (%p104_p3) target bundleno = 37 (0x25), region = 24 }
   0xe   : > { %s339_s6 = smov (!%p124_p4, %s276_s6), 1 }
   0xf   : > { %s233_s10 = sshll.u32 %s339_s6, 3  ;;  %s234_s11 = sshll.u32 %s339_s6, 1 }
  0x10   : > { %s130_s14 = scalar_lea.vmem %s332_s0, %s233_s10  ;;  %s134_s17 = scalar_lea.vmem %s333_s1, %s234_s11 }
  0x11   : > { %v135_v0 = vld [vmem:[%s130_s14] sm:$0xff]  ;;  %159 = vst.msk [vmem:[%s134_s17] sm:$0x3] %vm158_vm0, %v286_v1 }
  0x12   : > { %v137_v2 = vsel %vm136_vm1, %v135_v0, 0.0  ;;  %v144_v3 = vmul.f32 %v135_v0, %v135_v0 }
  0x13   : > { %v138_v4 = vrot.slane %v137_v2, 4 }
  0x14   : > { %v145_v5 = vsel %vm136_vm1, %v144_v3, 0.0 }
  0x15   : > { %v139_v6 = vadd.f32 %v138_v4, %v137_v2  ;;  %v146_v7 = vrot.slane %v145_v5, 4 }
  0x17   : > { %v140_v8 = vrot.slane %v139_v6, 2  ;;  %v147_v9 = vadd.f32 %v146_v7, %v145_v5 }
  0x18   : > { %v160_v17 = vld [vmem:[%s134_s17] sm:$0x3] }
  0x19   : > { %v141_v10 = vadd.f32 %v140_v8, %v139_v6  ;;  %v148_v11 = vrot.slane %v147_v9, 2 }
  0x1b   : > { %v142_v12 = vrot.slane %v141_v10, 1  ;;  %v149_v13 = vadd.f32 %v148_v11, %v147_v9 }
  0x1d   : > { %v143_v14 = vadd.f32 %v142_v12, %v141_v10  ;;  %v150_v15 = vrot.slane %v149_v13, 1 }
  0x1f   : > { %v151_v16 = vadd.f32 %v150_v15, %v149_v13 }
  0x21   : > { %v153_v18 = vsel %vm152_vm2, %v143_v14, %v151_v16 }
  0x22   : > { %v161_v19 = vadd.f32 %v160_v17, %v153_v18 }
  0x24   : > { %163 = vst.msk [vmem:[%s134_s17] sm:$0x3] %vm158_vm0, %v161_v19 }
  0x25 PF: > { %s11_s8 = sadd.s32 1, %s284_s8   ;;  %s334_s6 = smov %s280_s7 }
  0x26   : > { %p8_p5 = scmp.ge.s32.totalorder %s11_s8, 4   ;;  %s335_s7 = smov %s337_s9 }
  0x28   :  { %10 = sbr.rel (!%p8_p5) target bundleno = 2 (0x2), region = 58 }

// kernel: conv_bn_forward.9
= control target key start
LH: loop header
LB: loop body
LE: loop exit
PB: predicated region body
PF: predicated region fallthrough
CT: control target
= control target key end

     0   :  { %s747_s21 = smov 0   ;;  %s749_s22 = smov 0   ;;  %s811_s0 = inlined_call_operand.vmem [shape: f32[2,16,64], index: 0, kind: input, shape index: {}]   ;;  %s812_s1 = inlined_call_operand.vmem [shape: f32[2,8,32], index: 1, kind: input, shape index: {}]   ;;  %s813_s2 = inlined_call_operand.vmem [shape: f32[16,8], index: 2, kind: input, shape index: {}]   ;;  %s814_s3 = inlined_call_operand.vmem [shape: f32[32,64], index: 3, kind: input, shape index: {}]   ;;  %s815_s4 = inlined_call_operand.vmem [shape: f32[1,64], index: 4, kind: input, shape index: {}]   ;;  %s816_s5 = inlined_call_operand.vmem [shape: f32[1,64], index: 5, kind: input, shape index: {}]   ;;  %s817_s6 = inlined_call_operand.vmem [shape: f32[2,16,64], index: 6, kind: output, shape index: {}]  }
   0x1   :  { %s751_s23 = smov 0  }
   0x2 LB: > { %s28_s24 = sadd.s32 1, %s703_s22  ;;  %p613_p0 = scmp.ge.s32.totalorder %s707_s23, 1  ;;  %s707_s23 = sphi %s751_s23, %s16_s23   ;;  %s703_s22 = sphi %s749_s22, %s819_s22   ;;  %s699_s21 = sphi %s747_s21, %s818_s21  }
   0x3   : > { %p30_p1 = scmp.ge.s32.totalorder %s28_s24, 2  ;;  %p247_p2 = scmp.lt.s32.totalorder %s707_s23, 3 }
   0x5   : > { %s821_s24 = smov (%p30_p1, %s28_s24), 0  ;;  %p248_p3 = pnand %p613_p0, %p247_p2 }
   0x6   : > { %v322_v0 = vld [vmem:[%s814_s3] sm:$0xff] (!%p248_p3)  ;;  %v323_v1 = vld [vmem:[%s814_s3 + $0x8] sm:$0xff] (!%p248_p3)  ;;  %v324_v2 = vld [vmem:[%s814_s3 + $0x10] sm:$0xff] (!%p248_p3)  ;;  %v709_v3 = vmov (!%p248_p3), 0.0|0.0   ;;  %vm710_vm0 = vmmov (!%p248_p3), 0   ;;  %v711_v6 = vmov (!%p248_p3), 0.0  }
   0x7   : > { %251 = sbr.rel (%p248_p3) target bundleno = 452 (0x1c4), region = 44  ;;  %652 = vmatprep.subr.bf16.mxu0 (!%p248_p3), %v709_v3  ;;  %v653_v4 = vpack.c.bf16 (!%p248_p3), %v323_v1, %v322_v0  ;;  %v325_v5 = vld [vmem:[%s814_s3 + $0x18] sm:$0xff] (!%p248_p3)  ;;  %644 = vmatprep.mubr.msk.f32.mxu0 (!%p248_p3), %vm710_vm0, %v711_v6  ;;  %p293_p4 = scmp.lt.s32.totalorder (!%p248_p3), %s699_s21, 1  ;;  %vm326_vm1 = vcmask (!%p248_p3), 261120   ;;  %v319_v9 = vld [vmem:[%s813_s2] sm:$0xff] (!%p248_p3)  ;;  %vm400_vm2 = vcmask (!%p248_p3), 64512  }
   0x8   : > { %v656_v7 = vpack.c.bf16 (!%p248_p3), %v325_v5, %v324_v2  ;;  %649 = vmatprep.mubr.msk.f32.mxu1 (!%p248_p3), %vm400_vm2, %v319_v9  ;;  %v320_v11 = vld [vmem:[%s813_s2 + $0x8] sm:$0xff] (!%p248_p3)  ;;  %v622_v16 = vld [vmem:[%s815_s4] ss:$0 sm:$0xff] (!%p248_p3)  ;;  %vm504_vm3 = vcmask (!%p248_p3), 523264  }
   0x9   : > { %654 = vmatpush3.bf16.msra.mxu0 (!%p248_p3), %v653_v4  ;;  %v623_v19 = vld [vmem:[%s816_s5] ss:$0 sm:$0xff] (!%p248_p3) }
   0xa   : > { %655 = vmatprep.subr.bf16.mxu0 (!%p248_p3), %v709_v3 }
   0xd   : > { %657 = vmatpush3.bf16.msra.mxu0 (!%p248_p3), %v656_v7 }
   0xe   : > { %s823_s21 = smov (!%p293_p4, %s699_s21), 1 }
   0xf   : > { %s616_s9 = sshll.u32 %s823_s21, 3  ;;  %s626_s17 = sshll.u32 %s823_s21, 4 }
  0x10   : > { %s308_s12 = scalar_lea.vmem %s812_s1, %s616_s9  ;;  %s300_s20 = scalar_lea.vmem %s811_s0, %s626_s17 }
  0x11   : > { %v321_v8 = vld [vmem:[%s308_s12] sm:$0xff]  ;;  %v483_v13 = vld [vmem:[%s300_s20 + $0x8] sm:$0xff]  ;;  %s317_s30 = scalar_lea.vmem %s817_s6, %s626_s17 }
  0x12   : > { %645 = vmatmul.mubr.msk.f32.vlgmr.msra.gmra.mrb[0].mxu0 %vm326_vm1, %v321_v8  ;;  %v482_v14 = vld [vmem:[%s300_s20] sm:$0xff] }
  0xe5   : > { %v396_v10 = vpop.f32.mrb[0].mxu0 }
  0xe6   : > { %v646_v12 = vpop.f32.mrb[1].mxu0  ;;  %647 = vmatprep.subr.mxu1 %v396_v10 }
  0xe7   : > { %648 = vmatpush3.msra.mxu1 %v396_v10 }
  0xe8   : > { %650 = vmatmul.mubr.msk.f32.vlgmr.msra.gmra.mrb[0].mxu1 %vm400_vm2, %v320_v11 }
 0x1bb   : > { %v651_v15 = vpop.f32.mrb[0].mxu1 }
 0x1bc   : > { %v485_v17 = vadd.f32 %v651_v15, %v483_v13  ;;  %v473_v18 = vpop.f32.mrb[1].mxu1 }
 0x1bd   : > { %v484_v20 = vadd.f32 %v482_v14, %v473_v18 }
 0x1be   : > { %v494_v21 = vmul.f32 %v622_v16, %v485_v17 }
 0x1bf   : > { %v493_v22 = vmul.f32 %v622_v16, %v484_v20 }
 0x1c0   : > { %v503_v23 = vadd.f32 %v623_v19, %v494_v21 }
 0x1c1   : > { %v502_v24 = vadd.f32 %v623_v19, %v493_v22 }
 0x1c2   : > { %506 = vst.msk [vmem:[%s317_s30 + $0x8] sm:$0xff] %vm504_vm3, %v503_v23 }
 0x1c3   : > { %505 = vst.msk [vmem:[%s317_s30] sm:$0xff] %vm504_vm3, %v502_v24 }
 0x1c4 PF: > { %s16_s23 = sadd.s32 1, %s707_s23   ;;  %s818_s21 = smov %s703_s22 }
 0x1c5   : > { %p13_p5 = scmp.ge.s32.totalorder %s16_s23, 4   ;;  %s819_s22 = smov %s821_s24 }
 0x1c7   :  { %15 = sbr.rel (!%p13_p5) target bundleno = 2 (0x2), region = 77 }

// kernel: conv_bn_forward.11
= control target key start
LH: loop header
LB: loop body
LE: loop exit
PB: predicated region body
PF: predicated region fallthrough
CT: control target
= control target key end

     0   :  { %s369_s12 = smov 0   ;;  %s371_s13 = smov 0   ;;  %s396_s0 = inlined_call_operand.vmem [shape: f32[2,8,32], index: 0, kind: input, shape index: {}]   ;;  %s397_s1 = inlined_call_operand.vmem [shape: f32[1,32], index: 1, kind: input, shape index: {}]   ;;  %s398_s2 = inlined_call_operand.vmem [shape: f32[1,32], index: 2, kind: input, shape index: {}]   ;;  %s399_s3 = inlined_call_operand.vmem [shape: f32[2,8,32], index: 3, kind: output, shape index: {}]  }
   0x1   :  { %s373_s14 = smov 0  }
   0x2 LB: > { %s25_s15 = sadd.s32 1, %s343_s13  ;;  %p294_p0 = scmp.ge.s32.totalorder %s347_s14, 1  ;;  %s347_s14 = sphi %s373_s14, %s13_s14   ;;  %s343_s13 = sphi %s371_s13, %s401_s13   ;;  %s339_s12 = sphi %s369_s12, %s400_s12  }
   0x3   : > { %p27_p1 = scmp.ge.s32.totalorder %s25_s15, 2  ;;  %p155_p2 = scmp.lt.s32.totalorder %s347_s14, 3 }
   0x5   : > { %s403_s15 = smov (%p27_p1, %s25_s15), 0  ;;  %p156_p3 = pnand %p294_p0, %p155_p2 }
   0x6   : > { %p183_p4 = scmp.lt.s32.totalorder (!%p156_p3), %s339_s12, 1  ;;  %v297_v0 = vld [vmem:[%s397_s1] ss:$0 sm:$0xff] (!%p156_p3)  ;;  %vm214_vm0 = vcmask (!%p156_p3), 261120  }
   0x7   : > { %159 = sbr.rel (%p156_p3) target bundleno = 23 (0x17), region = 32  ;;  %v298_v2 = vld [vmem:[%s398_s2] ss:$0 sm:$0xff] (!%p156_p3) }
   0xe   : > { %s405_s12 = smov (!%p183_p4, %s339_s12), 1 }
   0xf   : > { %s295_s16 = sshll.u32 %s405_s12, 3 }
  0x10   : > { %s189_s21 = scalar_lea.vmem %s396_s0, %s295_s16  ;;  %s196_s26 = scalar_lea.vmem %s399_s3, %s295_s16 }
  0x11   : > { %v197_v1 = vld [vmem:[%s189_s21] sm:$0xff] }
  0x12   : > { %v205_v3 = vmul.f32 %v297_v0, %v197_v1 }
  0x14   : > { %v213_v4 = vadd.f32 %v298_v2, %v205_v3 }
  0x16   : > { %215 = vst.msk [vmem:[%s196_s26] sm:$0xff] %vm214_vm0, %v213_v4 }
  0x17 PF: > { %s13_s14 = sadd.s32 1, %s347_s14   ;;  %s400_s12 = smov %s343_s13 }
  0x18   : > { %p10_p5 = scmp.ge.s32.totalorder %s13_s14, 4   ;;  %s401_s13 = smov %s403_s15 }
  0x1a   :  { %12 = sbr.rel (!%p10_p5) target bundleno = 2 (0x2), region = 62 }

</bundles_post_ra>
